<compile_context>
chip_gen: v7x
topology: tpu7x:2x2x1
jax: 0.10.0
libtpu: 0.0.40
codegen_flags: <defaults>
</compile_context>

<pallas_src>
import functools

import jax
import jax.numpy as jnp
from jax import lax
from jax.experimental import pallas as pl
from jax.experimental.pallas import tpu as pltpu


GATE_PAD = 128   # padded hidden size: each LSTM gate occupies a full 128-lane block
OUT_PAD = 128    # padded target size: lane-dense output store


def regression_kernel(tok_ref, proj_ref, whh_ref, wout_ref, bout_ref, out_ref,
                      *, num_targets):
    """Fused gather + LSTM recurrence + linear head + log_softmax*9+1.

    tok_ref  : (S,)       int32  (SMEM, scalar-prefetched token ids)
    proj_ref : (V, 4*Hp)  f32    precomputed  emb @ W_ih^T + b  (gate-padded)
    whh_ref  : (Hp, 4*Hp) f32    W_hh^T, gate-padded, padded rows/cols are zero
    wout_ref : (Hp, Tp)   f32    hidden2tag^T, zero-padded
    bout_ref : (1, Tp)    f32
    out_ref  : (S, Tp)    f32    lane-dense output (real targets in [:, :T])
    """
    S, Tp = out_ref.shape
    Hp = whh_ref.shape[0]

    # ---- LSTM recurrence. h/c stay in vregs; loop fully unrolled (S static).
    #      Input path per step is a single gathered (1, 4*Hp) row of the
    #      pre-projected table (no matmul on the input side).  Gate slices are
    #      whole 128-lane vregs (Hp = 128).  Padded lanes: gates == 0 pre-act,
    #      so c_pad stays 0 and h_pad stays 0 exactly. -----------------------
    h = jnp.zeros((1, Hp), jnp.float32)
    c = jnp.zeros((1, Hp), jnp.float32)
    hs = []
    for t in range(S):
        xw_t = proj_ref[pl.ds(tok_ref[t], 1), :]                     # (1, 4*Hp)
        gates = xw_t + jnp.dot(
            h, whh_ref[...], preferred_element_type=jnp.float32)     # (1, 4*Hp)
        i_g = jax.nn.sigmoid(gates[:, 0 * Hp:1 * Hp])
        f_g = jax.nn.sigmoid(gates[:, 1 * Hp:2 * Hp])
        g_g = jnp.tanh(gates[:, 2 * Hp:3 * Hp])
        o_g = jax.nn.sigmoid(gates[:, 3 * Hp:4 * Hp])
        c = f_g * c + i_g * g_g
        h = o_g * jnp.tanh(c)
        hs.append(h)
    hidden = jnp.concatenate(hs, axis=0)                              # (S, Hp)

    # ---- hidden2tag + masked, max-stabilized log_softmax over real targets,
    #      then *9 + 1.  Store is lane-dense (S, 128). -----------------------
    tag = jnp.dot(hidden, wout_ref[...],
                  preferred_element_type=jnp.float32) + bout_ref[...]  # (S, Tp)
    col = lax.broadcasted_iota(jnp.int32, (S, Tp), 1)
    tag = jnp.where(col < num_targets, tag, -1e30)    # padded targets excluded
    m = jnp.max(tag, axis=1, keepdims=True)
    lse = jnp.log(jnp.sum(jnp.exp(tag - m), axis=1, keepdims=True)) + m
    out_ref[...] = (tag - lse) * 9.0 + 1.0


def prepare_params(emb_table, w_ih, w_hh, b_ih, b_hh, w_out, b_out):
    """One-time weight re-layout + embedding/input-projection folding."""
    f32 = jnp.float32
    E = emb_table.shape[1]
    H = w_hh.shape[1]
    T = w_out.shape[0]
    Hp, Tp = GATE_PAD, OUT_PAD

    # PyTorch gate order along the 4H axis is (i, f, g, o).
    wih = (jnp.zeros((E, 4, Hp), f32)
           .at[:, :, :H].set(w_ih.T.astype(f32).reshape(E, 4, H))
           .reshape(E, 4 * Hp))
    b = (jnp.zeros((4, Hp), f32)
         .at[:, :H].set((b_ih + b_hh).astype(f32).reshape(4, H))
         .reshape(1, 4 * Hp))
    # Fold embedding lookup + input projection + bias into one table:
    #   proj[v] = emb[v] @ W_ih^T + (b_ih + b_hh)     (gate-padded lanes = 0)
    proj = emb_table.astype(f32) @ wih + b                       # (V, 4*Hp)

    whh = (jnp.zeros((Hp, 4, Hp), f32)
           .at[:H, :, :H].set(w_hh.T.astype(f32).reshape(H, 4, H))
           .reshape(Hp, 4 * Hp))
    wout = jnp.zeros((Hp, Tp), f32).at[:H, :T].set(w_out.T.astype(f32))
    bout = jnp.zeros((1, Tp), f32).at[0, :T].set(b_out.astype(f32))
    return proj, whh, wout, bout


@functools.partial(jax.jit, static_argnames=("target_size",))
def regression_forward(tokens, proj, whh, wout, bout, *, target_size):
    """tokens: (S,) int32 -> (S, target_size) f32."""
    S = tokens.shape[0]
    V, G = proj.shape
    Hp = whh.shape[0]
    Tp = wout.shape[1]

    kernel = functools.partial(regression_kernel, num_targets=target_size)
    out_padded = pl.pallas_call(
        kernel,
        out_shape=jax.ShapeDtypeStruct((S, Tp), jnp.float32),
        grid_spec=pltpu.PrefetchScalarGridSpec(
            num_scalar_prefetch=1,          # tokens -> SMEM
            grid=(1,),
            in_specs=[
                pl.BlockSpec((V, G), lambda i, tok: (0, 0)),          # proj table
                pl.BlockSpec((Hp, 4 * Hp), lambda i, tok: (0, 0)),    # W_hh^T
                pl.BlockSpec((Hp, Tp), lambda i, tok: (0, 0)),        # W_out^T
                pl.BlockSpec((1, Tp), lambda i, tok: (0, 0)),         # b_out
            ],
            out_specs=pl.BlockSpec((S, Tp), lambda i, tok: (0, 0)),
        ),
        compiler_params=pltpu.CompilerParams(
            dimension_semantics=("arbitrary",)),
    )(tokens.astype(jnp.int32), proj, whh, wout, bout)
    return out_padded[:, :target_size]


def regression_reference(tokens, emb_table, w_ih, w_hh, b_ih, b_hh, w_out, b_out):
    """Pure-JAX reference (same math, unpadded) for correctness checking."""
    H = w_hh.shape[1]
    embeds = jnp.take(emb_table, tokens, axis=0).astype(jnp.float32)

    def step(carry, x):
        h, c = carry
        gates = x @ w_ih.T + h @ w_hh.T + b_ih + b_hh
        i_g = jax.nn.sigmoid(gates[0 * H:1 * H])
        f_g = jax.nn.sigmoid(gates[1 * H:2 * H])
        g_g = jnp.tanh(gates[2 * H:3 * H])
        o_g = jax.nn.sigmoid(gates[3 * H:4 * H])
        c_new = f_g * c + i_g * g_g
        h_new = o_g * jnp.tanh(c_new)
        return (h_new, c_new), h_new

    _, hs = lax.scan(step, (jnp.zeros(H, jnp.float32), jnp.zeros(H, jnp.float32)), embeds)
    tag = hs @ w_out.T + b_out
    return jax.nn.log_softmax(tag, axis=1) * 9.0 + 1.0


if __name__ == "__main__":
    # Small, module-consistent shapes.
    CHARACTER_SIZE = 251    # fixed in __init__
    EMB_DIM = 32
    HIDDEN_DIM = 32
    TARGET_SIZE = 8
    SEQ_LEN = 8

    key = jax.random.PRNGKey(0)
    k_tok, k_emb, k_wih, k_whh, k_bih, k_bhh, k_wo, k_bo = jax.random.split(key, 8)

    tokens = jax.random.randint(k_tok, (SEQ_LEN,), 0, CHARACTER_SIZE, dtype=jnp.int32)

    scale = 0.1
    emb_table = scale * jax.random.normal(k_emb, (CHARACTER_SIZE, EMB_DIM), jnp.float32)
    w_ih = scale * jax.random.normal(k_wih, (4 * HIDDEN_DIM, EMB_DIM), jnp.float32)
    w_hh = scale * jax.random.normal(k_whh, (4 * HIDDEN_DIM, HIDDEN_DIM), jnp.float32)
    b_ih = scale * jax.random.normal(k_bih, (4 * HIDDEN_DIM,), jnp.float32)
    b_hh = scale * jax.random.normal(k_bhh, (4 * HIDDEN_DIM,), jnp.float32)
    w_out = scale * jax.random.normal(k_wo, (TARGET_SIZE, HIDDEN_DIM), jnp.float32)
    b_out = scale * jax.random.normal(k_bo, (TARGET_SIZE,), jnp.float32)

    # One-time parameter re-layout + embedding/input-projection folding
    # (hoisted out of the per-call path).
    params = prepare_params(emb_table, w_ih, w_hh, b_ih, b_hh, w_out, b_out)

    # TODO(synk): the original module's constructor is internally inconsistent
    # (bidirectional flag, attribute-name typos, host-side print); this follows
    # the forward() semantics with the single-layer unidirectional LSTM implied
    # by init_hidden().
    out = regression_forward(tokens, *params, target_size=TARGET_SIZE)
    jax.block_until_ready(out)

    ref = regression_reference(tokens, emb_table, w_ih, w_hh, b_ih, b_hh, w_out, b_out)
    assert out.shape == (SEQ_LEN, TARGET_SIZE)
    assert out.dtype == jnp.float32
    assert jnp.allclose(out, ref, atol=1e-3, rtol=1e-3), float(jnp.max(jnp.abs(out - ref)))
    print("KERNEL_OK")
</pallas_src>

<mosaic_0001>
module attributes {stable_mosaic.version = 11 : i64} {
  func.func @regression_kernel(%arg0: i32, %arg1: memref<8xi32, #tpu.memory_space<smem>>, %arg2: memref<251x512xf32, #tpu.memory_space<vmem>>, %arg3: memref<128x512xf32, #tpu.memory_space<vmem>>, %arg4: memref<128x128xf32, #tpu.memory_space<vmem>>, %arg5: memref<1x128xf32, #tpu.memory_space<vmem>>, %arg6: memref<8x128xf32, #tpu.memory_space<vmem>>) attributes {dimension_semantics = [#tpu.dimension_semantics<arbitrary>], iteration_bounds = array<i64: 1>, scalar_prefetch = 1 : i64, scratch_operands = 0 : i64, tpu.core_type = #tpu.core_type<tc>, window_params = [{pipeline_mode = #tpu.pipeline_mode<synchronous>, transform_indices = @transform_0, window_bounds = array<i64: 251, 512>}, {pipeline_mode = #tpu.pipeline_mode<synchronous>, transform_indices = @transform_1, window_bounds = array<i64: 128, 512>}, {pipeline_mode = #tpu.pipeline_mode<synchronous>, transform_indices = @transform_2, window_bounds = array<i64: 128, 128>}, {pipeline_mode = #tpu.pipeline_mode<synchronous>, transform_indices = @transform_3, window_bounds = array<i64: 1, 128>}, {pipeline_mode = #tpu.pipeline_mode<synchronous>, transform_indices = @transform_4, window_bounds = array<i64: 8, 128>}]} {
    %cst = arith.constant 0.000000e+00 : f32
    %0 = vector.broadcast %cst : f32 to vector<1x128xf32>
    %cst_0 = arith.constant 0.000000e+00 : f32
    %1 = vector.broadcast %cst_0 : f32 to vector<1x128xf32>
    %c0 = arith.constant 0 : index
    %2 = memref.load %arg1[%c0] : memref<8xi32, #tpu.memory_space<smem>>
    %3 = arith.index_cast %2 : i32 to index
    %c0_1 = arith.constant 0 : index
    %4 = vector.load %arg2[%3, %c0_1] : memref<251x512xf32, #tpu.memory_space<vmem>>, vector<1x512xf32>
    %c0_2 = arith.constant 0 : index
    %c0_3 = arith.constant 0 : index
    %5 = vector.load %arg3[%c0_2, %c0_3] : memref<128x512xf32, #tpu.memory_space<vmem>>, vector<128x512xf32>
    %cst_4 = arith.constant dense<0.000000e+00> : vector<1x512xf32>
    %6 = tpu.matmul %0, %5, %cst_4 {dimension_numbers = #tpu.dot_dimension_numbers<[1], [0], [0], [1], [0, 0, 1, 1], [], []>} : vector<1x128xf32>, vector<128x512xf32>, vector<1x512xf32> -> vector<1x512xf32>
    %7 = arith.addf %4, %6 : vector<1x512xf32>
    %8 = vector.extract_strided_slice %7 {offsets = [0, 0], sizes = [1, 128], strides = [1, 1]} : vector<1x512xf32> to vector<1x128xf32>
    %9 = arith.negf %8 : vector<1x128xf32>
    %10 = math.exp %9 : vector<1x128xf32>
    %cst_5 = arith.constant 1.000000e+00 : f32
    %11 = vector.broadcast %cst_5 : f32 to vector<1x128xf32>
    %12 = arith.addf %11, %10 : vector<1x128xf32>
    %13 = arith.divf %11, %12 : vector<1x128xf32>
    %14 = vector.extract_strided_slice %7 {offsets = [0, 128], sizes = [1, 128], strides = [1, 1]} : vector<1x512xf32> to vector<1x128xf32>
    %15 = arith.negf %14 : vector<1x128xf32>
    %16 = math.exp %15 : vector<1x128xf32>
    %cst_6 = arith.constant 1.000000e+00 : f32
    %17 = vector.broadcast %cst_6 : f32 to vector<1x128xf32>
    %18 = arith.addf %17, %16 : vector<1x128xf32>
    %19 = arith.divf %17, %18 : vector<1x128xf32>
    %20 = vector.extract_strided_slice %7 {offsets = [0, 256], sizes = [1, 128], strides = [1, 1]} : vector<1x512xf32> to vector<1x128xf32>
    %21 = math.tanh %20 : vector<1x128xf32>
    %22 = vector.extract_strided_slice %7 {offsets = [0, 384], sizes = [1, 128], strides = [1, 1]} : vector<1x512xf32> to vector<1x128xf32>
    %23 = arith.negf %22 : vector<1x128xf32>
    %24 = math.exp %23 : vector<1x128xf32>
    %cst_7 = arith.constant 1.000000e+00 : f32
    %25 = vector.broadcast %cst_7 : f32 to vector<1x128xf32>
    %26 = arith.addf %25, %24 : vector<1x128xf32>
    %27 = arith.divf %25, %26 : vector<1x128xf32>
    %28 = arith.mulf %19, %1 : vector<1x128xf32>
    %29 = arith.mulf %13, %21 : vector<1x128xf32>
    %30 = arith.addf %28, %29 : vector<1x128xf32>
    %31 = math.tanh %30 : vector<1x128xf32>
    %32 = arith.mulf %27, %31 : vector<1x128xf32>
    %c1 = arith.constant 1 : index
    %33 = memref.load %arg1[%c1] : memref<8xi32, #tpu.memory_space<smem>>
    %34 = arith.index_cast %33 : i32 to index
    %c0_8 = arith.constant 0 : index
    %35 = vector.load %arg2[%34, %c0_8] : memref<251x512xf32, #tpu.memory_space<vmem>>, vector<1x512xf32>
    %c0_9 = arith.constant 0 : index
    %c0_10 = arith.constant 0 : index
    %36 = vector.load %arg3[%c0_9, %c0_10] : memref<128x512xf32, #tpu.memory_space<vmem>>, vector<128x512xf32>
    %cst_11 = arith.constant dense<0.000000e+00> : vector<1x512xf32>
    %37 = tpu.matmul %32, %36, %cst_11 {dimension_numbers = #tpu.dot_dimension_numbers<[1], [0], [0], [1], [0, 0, 1, 1], [], []>} : vector<1x128xf32>, vector<128x512xf32>, vector<1x512xf32> -> vector<1x512xf32>
    %38 = arith.addf %35, %37 : vector<1x512xf32>
    %39 = vector.extract_strided_slice %38 {offsets = [0, 0], sizes = [1, 128], strides = [1, 1]} : vector<1x512xf32> to vector<1x128xf32>
    %40 = arith.negf %39 : vector<1x128xf32>
    %41 = math.exp %40 : vector<1x128xf32>
    %cst_12 = arith.constant 1.000000e+00 : f32
    %42 = vector.broadcast %cst_12 : f32 to vector<1x128xf32>
    %43 = arith.addf %42, %41 : vector<1x128xf32>
    %44 = arith.divf %42, %43 : vector<1x128xf32>
    %45 = vector.extract_strided_slice %38 {offsets = [0, 128], sizes = [1, 128], strides = [1, 1]} : vector<1x512xf32> to vector<1x128xf32>
    %46 = arith.negf %45 : vector<1x128xf32>
    %47 = math.exp %46 : vector<1x128xf32>
    %cst_13 = arith.constant 1.000000e+00 : f32
    %48 = vector.broadcast %cst_13 : f32 to vector<1x128xf32>
    %49 = arith.addf %48, %47 : vector<1x128xf32>
    %50 = arith.divf %48, %49 : vector<1x128xf32>
    %51 = vector.extract_strided_slice %38 {offsets = [0, 256], sizes = [1, 128], strides = [1, 1]} : vector<1x512xf32> to vector<1x128xf32>
    %52 = math.tanh %51 : vector<1x128xf32>
    %53 = vector.extract_strided_slice %38 {offsets = [0, 384], sizes = [1, 128], strides = [1, 1]} : vector<1x512xf32> to vector<1x128xf32>
    %54 = arith.negf %53 : vector<1x128xf32>
    %55 = math.exp %54 : vector<1x128xf32>
    %cst_14 = arith.constant 1.000000e+00 : f32
    %56 = vector.broadcast %cst_14 : f32 to vector<1x128xf32>
    %57 = arith.addf %56, %55 : vector<1x128xf32>
    %58 = arith.divf %56, %57 : vector<1x128xf32>
    %59 = arith.mulf %50, %30 : vector<1x128xf32>
    %60 = arith.mulf %44, %52 : vector<1x128xf32>
    %61 = arith.addf %59, %60 : vector<1x128xf32>
    %62 = math.tanh %61 : vector<1x128xf32>
    %63 = arith.mulf %58, %62 : vector<1x128xf32>
    %c2 = arith.constant 2 : index
    %64 = memref.load %arg1[%c2] : memref<8xi32, #tpu.memory_space<smem>>
    %65 = arith.index_cast %64 : i32 to index
    %c0_15 = arith.constant 0 : index
    %66 = vector.load %arg2[%65, %c0_15] : memref<251x512xf32, #tpu.memory_space<vmem>>, vector<1x512xf32>
    %c0_16 = arith.constant 0 : index
    %c0_17 = arith.constant 0 : index
    %67 = vector.load %arg3[%c0_16, %c0_17] : memref<128x512xf32, #tpu.memory_space<vmem>>, vector<128x512xf32>
    %cst_18 = arith.constant dense<0.000000e+00> : vector<1x512xf32>
    %68 = tpu.matmul %63, %67, %cst_18 {dimension_numbers = #tpu.dot_dimension_numbers<[1], [0], [0], [1], [0, 0, 1, 1], [], []>} : vector<1x128xf32>, vector<128x512xf32>, vector<1x512xf32> -> vector<1x512xf32>
    %69 = arith.addf %66, %68 : vector<1x512xf32>
    %70 = vector.extract_strided_slice %69 {offsets = [0, 0], sizes = [1, 128], strides = [1, 1]} : vector<1x512xf32> to vector<1x128xf32>
    %71 = arith.negf %70 : vector<1x128xf32>
    %72 = math.exp %71 : vector<1x128xf32>
    %cst_19 = arith.constant 1.000000e+00 : f32
    %73 = vector.broadcast %cst_19 : f32 to vector<1x128xf32>
    %74 = arith.addf %73, %72 : vector<1x128xf32>
    %75 = arith.divf %73, %74 : vector<1x128xf32>
    %76 = vector.extract_strided_slice %69 {offsets = [0, 128], sizes = [1, 128], strides = [1, 1]} : vector<1x512xf32> to vector<1x128xf32>
    %77 = arith.negf %76 : vector<1x128xf32>
    %78 = math.exp %77 : vector<1x128xf32>
    %cst_20 = arith.constant 1.000000e+00 : f32
    %79 = vector.broadcast %cst_20 : f32 to vector<1x128xf32>
    %80 = arith.addf %79, %78 : vector<1x128xf32>
    %81 = arith.divf %79, %80 : vector<1x128xf32>
    %82 = vector.extract_strided_slice %69 {offsets = [0, 256], sizes = [1, 128], strides = [1, 1]} : vector<1x512xf32> to vector<1x128xf32>
    %83 = math.tanh %82 : vector<1x128xf32>
    %84 = vector.extract_strided_slice %69 {offsets = [0, 384], sizes = [1, 128], strides = [1, 1]} : vector<1x512xf32> to vector<1x128xf32>
    %85 = arith.negf %84 : vector<1x128xf32>
    %86 = math.exp %85 : vector<1x128xf32>
    %cst_21 = arith.constant 1.000000e+00 : f32
    %87 = vector.broadcast %cst_21 : f32 to vector<1x128xf32>
    %88 = arith.addf %87, %86 : vector<1x128xf32>
    %89 = arith.divf %87, %88 : vector<1x128xf32>
    %90 = arith.mulf %81, %61 : vector<1x128xf32>
    %91 = arith.mulf %75, %83 : vector<1x128xf32>
    %92 = arith.addf %90, %91 : vector<1x128xf32>
    %93 = math.tanh %92 : vector<1x128xf32>
    %94 = arith.mulf %89, %93 : vector<1x128xf32>
    %c3 = arith.constant 3 : index
    %95 = memref.load %arg1[%c3] : memref<8xi32, #tpu.memory_space<smem>>
    %96 = arith.index_cast %95 : i32 to index
    %c0_22 = arith.constant 0 : index
    %97 = vector.load %arg2[%96, %c0_22] : memref<251x512xf32, #tpu.memory_space<vmem>>, vector<1x512xf32>
    %c0_23 = arith.constant 0 : index
    %c0_24 = arith.constant 0 : index
    %98 = vector.load %arg3[%c0_23, %c0_24] : memref<128x512xf32, #tpu.memory_space<vmem>>, vector<128x512xf32>
    %cst_25 = arith.constant dense<0.000000e+00> : vector<1x512xf32>
    %99 = tpu.matmul %94, %98, %cst_25 {dimension_numbers = #tpu.dot_dimension_numbers<[1], [0], [0], [1], [0, 0, 1, 1], [], []>} : vector<1x128xf32>, vector<128x512xf32>, vector<1x512xf32> -> vector<1x512xf32>
    %100 = arith.addf %97, %99 : vector<1x512xf32>
    %101 = vector.extract_strided_slice %100 {offsets = [0, 0], sizes = [1, 128], strides = [1, 1]} : vector<1x512xf32> to vector<1x128xf32>
    %102 = arith.negf %101 : vector<1x128xf32>
    %103 = math.exp %102 : vector<1x128xf32>
    %cst_26 = arith.constant 1.000000e+00 : f32
    %104 = vector.broadcast %cst_26 : f32 to vector<1x128xf32>
    %105 = arith.addf %104, %103 : vector<1x128xf32>
    %106 = arith.divf %104, %105 : vector<1x128xf32>
    %107 = vector.extract_strided_slice %100 {offsets = [0, 128], sizes = [1, 128], strides = [1, 1]} : vector<1x512xf32> to vector<1x128xf32>
    %108 = arith.negf %107 : vector<1x128xf32>
    %109 = math.exp %108 : vector<1x128xf32>
    %cst_27 = arith.constant 1.000000e+00 : f32
    %110 = vector.broadcast %cst_27 : f32 to vector<1x128xf32>
    %111 = arith.addf %110, %109 : vector<1x128xf32>
    %112 = arith.divf %110, %111 : vector<1x128xf32>
    %113 = vector.extract_strided_slice %100 {offsets = [0, 256], sizes = [1, 128], strides = [1, 1]} : vector<1x512xf32> to vector<1x128xf32>
    %114 = math.tanh %113 : vector<1x128xf32>
    %115 = vector.extract_strided_slice %100 {offsets = [0, 384], sizes = [1, 128], strides = [1, 1]} : vector<1x512xf32> to vector<1x128xf32>
    %116 = arith.negf %115 : vector<1x128xf32>
    %117 = math.exp %116 : vector<1x128xf32>
    %cst_28 = arith.constant 1.000000e+00 : f32
    %118 = vector.broadcast %cst_28 : f32 to vector<1x128xf32>
    %119 = arith.addf %118, %117 : vector<1x128xf32>
    %120 = arith.divf %118, %119 : vector<1x128xf32>
    %121 = arith.mulf %112, %92 : vector<1x128xf32>
    %122 = arith.mulf %106, %114 : vector<1x128xf32>
    %123 = arith.addf %121, %122 : vector<1x128xf32>
    %124 = math.tanh %123 : vector<1x128xf32>
    %125 = arith.mulf %120, %124 : vector<1x128xf32>
    %c4 = arith.constant 4 : index
    %126 = memref.load %arg1[%c4] : memref<8xi32, #tpu.memory_space<smem>>
    %127 = arith.index_cast %126 : i32 to index
    %c0_29 = arith.constant 0 : index
    %128 = vector.load %arg2[%127, %c0_29] : memref<251x512xf32, #tpu.memory_space<vmem>>, vector<1x512xf32>
    %c0_30 = arith.constant 0 : index
    %c0_31 = arith.constant 0 : index
    %129 = vector.load %arg3[%c0_30, %c0_31] : memref<128x512xf32, #tpu.memory_space<vmem>>, vector<128x512xf32>
    %cst_32 = arith.constant dense<0.000000e+00> : vector<1x512xf32>
    %130 = tpu.matmul %125, %129, %cst_32 {dimension_numbers = #tpu.dot_dimension_numbers<[1], [0], [0], [1], [0, 0, 1, 1], [], []>} : vector<1x128xf32>, vector<128x512xf32>, vector<1x512xf32> -> vector<1x512xf32>
    %131 = arith.addf %128, %130 : vector<1x512xf32>
    %132 = vector.extract_strided_slice %131 {offsets = [0, 0], sizes = [1, 128], strides = [1, 1]} : vector<1x512xf32> to vector<1x128xf32>
    %133 = arith.negf %132 : vector<1x128xf32>
    %134 = math.exp %133 : vector<1x128xf32>
    %cst_33 = arith.constant 1.000000e+00 : f32
    %135 = vector.broadcast %cst_33 : f32 to vector<1x128xf32>
    %136 = arith.addf %135, %134 : vector<1x128xf32>
    %137 = arith.divf %135, %136 : vector<1x128xf32>
    %138 = vector.extract_strided_slice %131 {offsets = [0, 128], sizes = [1, 128], strides = [1, 1]} : vector<1x512xf32> to vector<1x128xf32>
    %139 = arith.negf %138 : vector<1x128xf32>
    %140 = math.exp %139 : vector<1x128xf32>
    %cst_34 = arith.constant 1.000000e+00 : f32
    %141 = vector.broadcast %cst_34 : f32 to vector<1x128xf32>
    %142 = arith.addf %141, %140 : vector<1x128xf32>
    %143 = arith.divf %141, %142 : vector<1x128xf32>
    %144 = vector.extract_strided_slice %131 {offsets = [0, 256], sizes = [1, 128], strides = [1, 1]} : vector<1x512xf32> to vector<1x128xf32>
    %145 = math.tanh %144 : vector<1x128xf32>
    %146 = vector.extract_strided_slice %131 {offsets = [0, 384], sizes = [1, 128], strides = [1, 1]} : vector<1x512xf32> to vector<1x128xf32>
    %147 = arith.negf %146 : vector<1x128xf32>
    %148 = math.exp %147 : vector<1x128xf32>
    %cst_35 = arith.constant 1.000000e+00 : f32
    %149 = vector.broadcast %cst_35 : f32 to vector<1x128xf32>
    %150 = arith.addf %149, %148 : vector<1x128xf32>
    %151 = arith.divf %149, %150 : vector<1x128xf32>
    %152 = arith.mulf %143, %123 : vector<1x128xf32>
    %153 = arith.mulf %137, %145 : vector<1x128xf32>
    %154 = arith.addf %152, %153 : vector<1x128xf32>
    %155 = math.tanh %154 : vector<1x128xf32>
    %156 = arith.mulf %151, %155 : vector<1x128xf32>
    %c5 = arith.constant 5 : index
    %157 = memref.load %arg1[%c5] : memref<8xi32, #tpu.memory_space<smem>>
    %158 = arith.index_cast %157 : i32 to index
    %c0_36 = arith.constant 0 : index
    %159 = vector.load %arg2[%158, %c0_36] : memref<251x512xf32, #tpu.memory_space<vmem>>, vector<1x512xf32>
    %c0_37 = arith.constant 0 : index
    %c0_38 = arith.constant 0 : index
    %160 = vector.load %arg3[%c0_37, %c0_38] : memref<128x512xf32, #tpu.memory_space<vmem>>, vector<128x512xf32>
    %cst_39 = arith.constant dense<0.000000e+00> : vector<1x512xf32>
    %161 = tpu.matmul %156, %160, %cst_39 {dimension_numbers = #tpu.dot_dimension_numbers<[1], [0], [0], [1], [0, 0, 1, 1], [], []>} : vector<1x128xf32>, vector<128x512xf32>, vector<1x512xf32> -> vector<1x512xf32>
    %162 = arith.addf %159, %161 : vector<1x512xf32>
    %163 = vector.extract_strided_slice %162 {offsets = [0, 0], sizes = [1, 128], strides = [1, 1]} : vector<1x512xf32> to vector<1x128xf32>
    %164 = arith.negf %163 : vector<1x128xf32>
    %165 = math.exp %164 : vector<1x128xf32>
    %cst_40 = arith.constant 1.000000e+00 : f32
    %166 = vector.broadcast %cst_40 : f32 to vector<1x128xf32>
    %167 = arith.addf %166, %165 : vector<1x128xf32>
    %168 = arith.divf %166, %167 : vector<1x128xf32>
    %169 = vector.extract_strided_slice %162 {offsets = [0, 128], sizes = [1, 128], strides = [1, 1]} : vector<1x512xf32> to vector<1x128xf32>
    %170 = arith.negf %169 : vector<1x128xf32>
    %171 = math.exp %170 : vector<1x128xf32>
    %cst_41 = arith.constant 1.000000e+00 : f32
    %172 = vector.broadcast %cst_41 : f32 to vector<1x128xf32>
    %173 = arith.addf %172, %171 : vector<1x128xf32>
    %174 = arith.divf %172, %173 : vector<1x128xf32>
    %175 = vector.extract_strided_slice %162 {offsets = [0, 256], sizes = [1, 128], strides = [1, 1]} : vector<1x512xf32> to vector<1x128xf32>
    %176 = math.tanh %175 : vector<1x128xf32>
    %177 = vector.extract_strided_slice %162 {offsets = [0, 384], sizes = [1, 128], strides = [1, 1]} : vector<1x512xf32> to vector<1x128xf32>
    %178 = arith.negf %177 : vector<1x128xf32>
    %179 = math.exp %178 : vector<1x128xf32>
    %cst_42 = arith.constant 1.000000e+00 : f32
    %180 = vector.broadcast %cst_42 : f32 to vector<1x128xf32>
    %181 = arith.addf %180, %179 : vector<1x128xf32>
    %182 = arith.divf %180, %181 : vector<1x128xf32>
    %183 = arith.mulf %174, %154 : vector<1x128xf32>
    %184 = arith.mulf %168, %176 : vector<1x128xf32>
    %185 = arith.addf %183, %184 : vector<1x128xf32>
    %186 = math.tanh %185 : vector<1x128xf32>
    %187 = arith.mulf %182, %186 : vector<1x128xf32>
    %c6 = arith.constant 6 : index
    %188 = memref.load %arg1[%c6] : memref<8xi32, #tpu.memory_space<smem>>
    %189 = arith.index_cast %188 : i32 to index
    %c0_43 = arith.constant 0 : index
    %190 = vector.load %arg2[%189, %c0_43] : memref<251x512xf32, #tpu.memory_space<vmem>>, vector<1x512xf32>
    %c0_44 = arith.constant 0 : index
    %c0_45 = arith.constant 0 : index
    %191 = vector.load %arg3[%c0_44, %c0_45] : memref<128x512xf32, #tpu.memory_space<vmem>>, vector<128x512xf32>
    %cst_46 = arith.constant dense<0.000000e+00> : vector<1x512xf32>
    %192 = tpu.matmul %187, %191, %cst_46 {dimension_numbers = #tpu.dot_dimension_numbers<[1], [0], [0], [1], [0, 0, 1, 1], [], []>} : vector<1x128xf32>, vector<128x512xf32>, vector<1x512xf32> -> vector<1x512xf32>
    %193 = arith.addf %190, %192 : vector<1x512xf32>
    %194 = vector.extract_strided_slice %193 {offsets = [0, 0], sizes = [1, 128], strides = [1, 1]} : vector<1x512xf32> to vector<1x128xf32>
    %195 = arith.negf %194 : vector<1x128xf32>
    %196 = math.exp %195 : vector<1x128xf32>
    %cst_47 = arith.constant 1.000000e+00 : f32
    %197 = vector.broadcast %cst_47 : f32 to vector<1x128xf32>
    %198 = arith.addf %197, %196 : vector<1x128xf32>
    %199 = arith.divf %197, %198 : vector<1x128xf32>
    %200 = vector.extract_strided_slice %193 {offsets = [0, 128], sizes = [1, 128], strides = [1, 1]} : vector<1x512xf32> to vector<1x128xf32>
    %201 = arith.negf %200 : vector<1x128xf32>
    %202 = math.exp %201 : vector<1x128xf32>
    %cst_48 = arith.constant 1.000000e+00 : f32
    %203 = vector.broadcast %cst_48 : f32 to vector<1x128xf32>
    %204 = arith.addf %203, %202 : vector<1x128xf32>
    %205 = arith.divf %203, %204 : vector<1x128xf32>
    %206 = vector.extract_strided_slice %193 {offsets = [0, 256], sizes = [1, 128], strides = [1, 1]} : vector<1x512xf32> to vector<1x128xf32>
    %207 = math.tanh %206 : vector<1x128xf32>
    %208 = vector.extract_strided_slice %193 {offsets = [0, 384], sizes = [1, 128], strides = [1, 1]} : vector<1x512xf32> to vector<1x128xf32>
    %209 = arith.negf %208 : vector<1x128xf32>
    %210 = math.exp %209 : vector<1x128xf32>
    %cst_49 = arith.constant 1.000000e+00 : f32
    %211 = vector.broadcast %cst_49 : f32 to vector<1x128xf32>
    %212 = arith.addf %211, %210 : vector<1x128xf32>
    %213 = arith.divf %211, %212 : vector<1x128xf32>
    %214 = arith.mulf %205, %185 : vector<1x128xf32>
    %215 = arith.mulf %199, %207 : vector<1x128xf32>
    %216 = arith.addf %214, %215 : vector<1x128xf32>
    %217 = math.tanh %216 : vector<1x128xf32>
    %218 = arith.mulf %213, %217 : vector<1x128xf32>
    %c7 = arith.constant 7 : index
    %219 = memref.load %arg1[%c7] : memref<8xi32, #tpu.memory_space<smem>>
    %220 = arith.index_cast %219 : i32 to index
    %c0_50 = arith.constant 0 : index
    %221 = vector.load %arg2[%220, %c0_50] : memref<251x512xf32, #tpu.memory_space<vmem>>, vector<1x512xf32>
    %c0_51 = arith.constant 0 : index
    %c0_52 = arith.constant 0 : index
    %222 = vector.load %arg3[%c0_51, %c0_52] : memref<128x512xf32, #tpu.memory_space<vmem>>, vector<128x512xf32>
    %cst_53 = arith.constant dense<0.000000e+00> : vector<1x512xf32>
    %223 = tpu.matmul %218, %222, %cst_53 {dimension_numbers = #tpu.dot_dimension_numbers<[1], [0], [0], [1], [0, 0, 1, 1], [], []>} : vector<1x128xf32>, vector<128x512xf32>, vector<1x512xf32> -> vector<1x512xf32>
    %224 = arith.addf %221, %223 : vector<1x512xf32>
    %225 = vector.extract_strided_slice %224 {offsets = [0, 0], sizes = [1, 128], strides = [1, 1]} : vector<1x512xf32> to vector<1x128xf32>
    %226 = arith.negf %225 : vector<1x128xf32>
    %227 = math.exp %226 : vector<1x128xf32>
    %cst_54 = arith.constant 1.000000e+00 : f32
    %228 = vector.broadcast %cst_54 : f32 to vector<1x128xf32>
    %229 = arith.addf %228, %227 : vector<1x128xf32>
    %230 = arith.divf %228, %229 : vector<1x128xf32>
    %231 = vector.extract_strided_slice %224 {offsets = [0, 128], sizes = [1, 128], strides = [1, 1]} : vector<1x512xf32> to vector<1x128xf32>
    %232 = arith.negf %231 : vector<1x128xf32>
    %233 = math.exp %232 : vector<1x128xf32>
    %cst_55 = arith.constant 1.000000e+00 : f32
    %234 = vector.broadcast %cst_55 : f32 to vector<1x128xf32>
    %235 = arith.addf %234, %233 : vector<1x128xf32>
    %236 = arith.divf %234, %235 : vector<1x128xf32>
    %237 = vector.extract_strided_slice %224 {offsets = [0, 256], sizes = [1, 128], strides = [1, 1]} : vector<1x512xf32> to vector<1x128xf32>
    %238 = math.tanh %237 : vector<1x128xf32>
    %239 = vector.extract_strided_slice %224 {offsets = [0, 384], sizes = [1, 128], strides = [1, 1]} : vector<1x512xf32> to vector<1x128xf32>
    %240 = arith.negf %239 : vector<1x128xf32>
    %241 = math.exp %240 : vector<1x128xf32>
    %cst_56 = arith.constant 1.000000e+00 : f32
    %242 = vector.broadcast %cst_56 : f32 to vector<1x128xf32>
    %243 = arith.addf %242, %241 : vector<1x128xf32>
    %244 = arith.divf %242, %243 : vector<1x128xf32>
    %245 = arith.mulf %236, %216 : vector<1x128xf32>
    %246 = arith.mulf %230, %238 : vector<1x128xf32>
    %247 = arith.addf %245, %246 : vector<1x128xf32>
    %248 = math.tanh %247 : vector<1x128xf32>
    %249 = arith.mulf %244, %248 : vector<1x128xf32>
    %250 = tpu.concatenate %32, %63, %94, %125, %156, %187, %218, %249 in 0 : vector<1x128xf32>, vector<1x128xf32>, vector<1x128xf32>, vector<1x128xf32>, vector<1x128xf32>, vector<1x128xf32>, vector<1x128xf32>, vector<1x128xf32> -> vector<8x128xf32>
    %c0_57 = arith.constant 0 : index
    %c0_58 = arith.constant 0 : index
    %251 = vector.load %arg4[%c0_57, %c0_58] : memref<128x128xf32, #tpu.memory_space<vmem>>, vector<128x128xf32>
    %cst_59 = arith.constant dense<0.000000e+00> : vector<8x128xf32>
    %252 = tpu.matmul %250, %251, %cst_59 {dimension_numbers = #tpu.dot_dimension_numbers<[1], [0], [0], [1], [0, 0, 1, 1], [], []>} : vector<8x128xf32>, vector<128x128xf32>, vector<8x128xf32> -> vector<8x128xf32>
    %c0_60 = arith.constant 0 : index
    %c0_61 = arith.constant 0 : index
    %253 = vector.load %arg5[%c0_60, %c0_61] : memref<1x128xf32, #tpu.memory_space<vmem>>, vector<1x128xf32>
    %254 = vector.broadcast %253 : vector<1x128xf32> to vector<8x128xf32>
    %255 = arith.addf %252, %254 : vector<8x128xf32>
    %256 = tpu.iota {dimensions = array<i32: 1>} : vector<8x128xi32>
    %c8_i32 = arith.constant 8 : i32
    %257 = vector.broadcast %c8_i32 : i32 to vector<8x128xi32>
    %258 = arith.cmpi slt, %256, %257 : vector<8x128xi32>
    %cst_62 = arith.constant -1.000000e+30 : f32
    %259 = vector.broadcast %cst_62 : f32 to vector<8x128xf32>
    %260 = arith.select %258, %255, %259 : vector<8x128xi1>, vector<8x128xf32>
    %cst_63 = arith.constant dense<0xFF800000> : vector<8xf32>
    %261 = vector.multi_reduction <maximumf>, %260, %cst_63 [1] : vector<8x128xf32> to vector<8xf32>
    %262 = vector.shape_cast %261 : vector<8xf32> to vector<8x1xf32>
    %263 = vector.broadcast %262 : vector<8x1xf32> to vector<8x128xf32>
    %264 = arith.subf %260, %263 : vector<8x128xf32>
    %265 = math.exp %264 : vector<8x128xf32>
    %cst_64 = arith.constant dense<0.000000e+00> : vector<8xf32>
    %266 = vector.multi_reduction <add>, %265, %cst_64 [1] : vector<8x128xf32> to vector<8xf32>
    %267 = vector.shape_cast %266 : vector<8xf32> to vector<8x1xf32>
    %268 = math.log %267 : vector<8x1xf32>
    %269 = arith.addf %268, %262 : vector<8x1xf32>
    %270 = vector.broadcast %269 : vector<8x1xf32> to vector<8x128xf32>
    %271 = arith.subf %260, %270 : vector<8x128xf32>
    %cst_65 = arith.constant 9.000000e+00 : f32
    %272 = vector.broadcast %cst_65 : f32 to vector<8x128xf32>
    %273 = arith.mulf %271, %272 : vector<8x128xf32>
    %cst_66 = arith.constant 1.000000e+00 : f32
    %274 = vector.broadcast %cst_66 : f32 to vector<8x128xf32>
    %275 = arith.addf %273, %274 : vector<8x128xf32>
    %c0_67 = arith.constant 0 : index
    %c0_68 = arith.constant 0 : index
    %276 = vector.load %arg6[%c0_67, %c0_68] : memref<8x128xf32, #tpu.memory_space<vmem>>, vector<8x128xf32>
    tpu.vector_store %arg6[%c0_67, %c0_68], %275 {strides = array<i32>} : memref<8x128xf32, #tpu.memory_space<vmem>>, vector<8x128xf32>,
    return
  }
  func.func @transform_0(%arg0: i32, %arg1: memref<8xi32, #tpu.memory_space<smem>>) -> (i32, i32) {
    %c0_i32 = arith.constant 0 : i32
    %c0_i32_0 = arith.constant 0 : i32
    %c0_i32_1 = arith.constant 0 : i32
    return %c0_i32, %c0_i32_0 : i32, i32
  }
  func.func @transform_1(%arg0: i32, %arg1: memref<8xi32, #tpu.memory_space<smem>>) -> (i32, i32) {
    %c0_i32 = arith.constant 0 : i32
    %c0_i32_0 = arith.constant 0 : i32
    %c0_i32_1 = arith.constant 0 : i32
    return %c0_i32, %c0_i32_0 : i32, i32
  }
  func.func @transform_2(%arg0: i32, %arg1: memref<8xi32, #tpu.memory_space<smem>>) -> (i32, i32) {
    %c0_i32 = arith.constant 0 : i32
    %c0_i32_0 = arith.constant 0 : i32
    %c0_i32_1 = arith.constant 0 : i32
    return %c0_i32, %c0_i32_0 : i32, i32
  }
  func.func @transform_3(%arg0: i32, %arg1: memref<8xi32, #tpu.memory_space<smem>>) -> (i32, i32) {
    %c0_i32 = arith.constant 0 : i32
    %c0_i32_0 = arith.constant 0 : i32
    %c0_i32_1 = arith.constant 0 : i32
    return %c0_i32, %c0_i32_0 : i32, i32
  }
  func.func @transform_4(%arg0: i32, %arg1: memref<8xi32, #tpu.memory_space<smem>>) -> (i32, i32) {
    %c0_i32 = arith.constant 0 : i32
    %c0_i32_0 = arith.constant 0 : i32
    %c0_i32_1 = arith.constant 0 : i32
    return %c0_i32, %c0_i32_0 : i32, i32
  }
}

</mosaic_0001>

<bundles_post_ra>
// kernel: regression_forward.1
= control target key start
LH: loop header
LB: loop body
LE: loop exit
PB: predicated region body
PF: predicated region fallthrough
CT: control target
= control target key end

     0   :  { %s3480_s0 = inlined_call_operand.hbm [shape: s32[8], index: 0, kind: input, shape index: {}]   ;;  %s3481_s1 = inlined_call_operand.hbm [shape: f32[251,512], index: 1, kind: input, shape index: {}]   ;;  %s3482_s2 = inlined_call_operand.hbm [shape: f32[128,512], index: 2, kind: input, shape index: {}]   ;;  %s3483_s3 = inlined_call_operand.hbm [shape: f32[128,128], index: 3, kind: input, shape index: {}]   ;;  %s3484_s4 = inlined_call_operand.vmem [shape: f32[1,128], index: 4, kind: input, shape index: {}]   ;;  %s3485_s5 = inlined_call_operand.hbm [shape: f32[8,128], index: 5, kind: output, shape index: {}]  }
   0x1   :  { %s2828_s20 = scalar_lea.hbm %s3480_s0, 16 }
   0x2   :  { %p2829_p0 = scmp.ne.s32.totalorder %s3480_s0, %s2828_s20  ;;  %p2832_p1 = scmp.lt.u32.totalorder %s2828_s20, %s3480_s0 }
   0x4   :  { %p2834_p2 = pnand %p2832_p1, %p2829_p0 }
   0x6   :  { %2837 = shalt.err (!%p2834_p2)  }
   0x7   :  { %s2934_s25 = smov [#allocation3]  }
   0x8   :  { %11 = dma.hbm_to_smem %s3480_s0, 16, %s2934_s25, [#allocation2] }
   0x9   :  { %2926 = dma.done.wait [#allocation2], 16 }
   0xa   :  { %2927 = vsyncadd [#allocation2], 4294967280 }
   0xb   :  { %13 = sfence }
   0xc   :  { %14 = vsyncpa [#allocation5], 0 }
   0xd   :  { %15 = vsyncpa [#allocation8], 0 }
   0xe   :  { %16 = vsyncpa [#allocation6], 0  ;;  %s2935_s28 = smov [#allocation7]   ;;  %s2936_s30 = smov [#allocation4]  }
   0xf   :  { %s34_s29 = sshll.u32 %s2935_s28, 4  ;;  %s22_s6 = sshll.u32 %s2936_s30, 4  ;;  %s35_s29 = int_to_ptr.vmem [resolvable:$true] %s34_s29  ;;  %s2989_s6 = int_to_ptr.vmem [resolvable:$true] %s22_s6 }
  0x10   :  { %s2838_s9 = scalar_lea.hbm %s3482_s2, 8192 }
  0x11   :  { %p2839_p3 = scmp.ne.s32.totalorder %s3482_s2, %s2838_s9  ;;  %p2842_p4 = scmp.lt.u32.totalorder %s2838_s9, %s3482_s2 }
  0x13   :  { %p2844_p5 = pnand %p2842_p4, %p2839_p3 }
  0x15   :  { %2847 = shalt.err (!%p2844_p5)
}
  0x16   :  { %s2848_s13 = scalar_lea.vmem %s35_s29, 8192  ;;  %p2853_p7 = scmp.lt.s32.totalorder %s35_s29, %s35_s29 }
  0x17   :  { %p2849_p6 = scmp.ne.s32.totalorder %s35_s29, %s2848_s13  ;;  %p2854_p8 = scmp.lt.s32.totalorder %s2848_s13, %s2848_s13 }
  0x19   :  { %p2855_p9 = por %p2854_p8, %p2853_p7 }
  0x1b   :  { %p2856_p10 = pnand %p2855_p9, %p2849_p6 }
  0x1d   :  { %2859 = shalt.err (!%p2856_p10)
}
  0x1e   :  { %s2937_s14 = smov 512   ;;  %s2938_s15 = smov 32  }
  0x1f   :  { %40 = dma.hbm_to_vmem [thread:$0]  %s3482_s2, 8192, %s35_s29, [#allocation8], %s2937_s14, %s2937_s14, %s2938_s15  }
  0x20   :  { %s2860_s20 = scalar_lea.hbm %s3481_s1, 16384 }
  0x21   :  { %p2861_p11 = scmp.ne.s32.totalorder %s3481_s1, %s2860_s20  ;;  %p2864_p12 = scmp.lt.u32.totalorder %s2860_s20, %s3481_s1 }
  0x23   :  { %p2866_p13 = pnand %p2864_p12, %p2861_p11 }
  0x25   :  { %2869 = shalt.err (!%p2866_p13)
}
  0x26   :  { %s2870_s25 = scalar_lea.vmem %s2989_s6, 16384  ;;  %p2875_p1 = scmp.lt.s32.totalorder %s2989_s6, %s2989_s6 }
  0x27   :  { %p2871_p0 = scmp.ne.s32.totalorder %s2989_s6, %s2870_s25  ;;  %p2876_p2 = scmp.lt.s32.totalorder %s2870_s25, %s2870_s25 }
  0x29   :  { %p2877_p3 = por %p2876_p2, %p2875_p1 }
  0x2b   :  { %p2878_p4 = pnand %p2877_p3, %p2871_p0 }
  0x2d   :  { %2881 = shalt.err (!%p2878_p4)
}
  0x2e   :  { %28 = dma.hbm_to_vmem [thread:$0]  %s3481_s1, 16384, %s2989_s6, [#allocation5], %s2937_s14, %s2937_s14, %s2938_s15  }
  0x2f   :  { %s2939_s27 = smov [#allocation9]   ;;  %s2882_s7 = scalar_lea.hbm %s3483_s3, 2048 }
  0x30   :  { %s46_s28 = sshll.u32 %s2939_s27, 4  ;;  %p2883_p5 = scmp.ne.s32.totalorder %s3483_s3, %s2882_s7  ;;  %s47_s28 = int_to_ptr.vmem [resolvable:$true] %s46_s28 }
  0x31   :  { %p2886_p6 = scmp.lt.u32.totalorder %s2882_s7, %s3483_s3 }
  0x33   :  { %p2888_p7 = pnand %p2886_p6, %p2883_p5 }
  0x35   :  { %2891 = shalt.err (!%p2888_p7)
}
  0x36   :  { %s2892_s0 = scalar_lea.vmem %s47_s28, 2048  ;;  %p2897_p9 = scmp.lt.s32.totalorder %s47_s28, %s47_s28 }
  0x37   :  { %p2893_p8 = scmp.ne.s32.totalorder %s47_s28, %s2892_s0  ;;  %p2898_p10 = scmp.lt.s32.totalorder %s2892_s0, %s2892_s0 }
  0x39   :  { %p2899_p11 = por %p2898_p10, %p2897_p9 }
  0x3b   :  { %p2900_p12 = pnand %p2899_p11, %p2893_p8 }
  0x3d   :  { %2903 = shalt.err (!%p2900_p12)
}
  0x3e   :  { %s2940_s1 = smov 128   ;;  %s2941_s6 = smov 8  }
  0x3f   :  { %52 = dma.hbm_to_vmem [thread:$0]  %s3483_s3, 2048, %s47_s28, [#allocation8], %s2940_s1, %s2940_s1, %s2941_s6  }
  0x40   :  { %2928 = dma.done.wait [#allocation5], 16384  }
  0x41   :  { %2929 = vsyncadd [#allocation5], 4294950912 }
  0x42   :  { %2930 = dma.done.wait [#allocation8], 10240  }
  0x43   :  { %2931 = vsyncadd [#allocation8], 4294957056  ;;  %v2942_v0 = vmov 0.0   ;;  %v75_v1 = vld [vmem:[#allocation7 + $0x8] sm:$0xff]  ;;  %v77_v3 = vld [vmem:[#allocation7 + $0x18] sm:$0xff]  ;;  %s64_s3 = sld [smem:[#allocation3]] }
  0x44   :  { %202 = vmatprep.mubr.f32.mxu0 %v2942_v0  ;;  %273 = vmatprep.mubr.f32.mxu1 %v2942_v0  ;;  %v79_v2 = vld [vmem:[#allocation7 + $0x28] sm:$0xff]  ;;  %v81_v5 = vld [vmem:[#allocation7 + $0x38] sm:$0xff]  ;;  %v74_v6 = vld [vmem:[#allocation7] sm:$0xff]  ;;  %s2044_s19 = sld [smem:[#allocation3 + $0x1]]  ;;  %s2050_s25 = sld [smem:[#allocation3 + $0x2]]  ;;  %vm1874_vm0 = vcmask 1040384  }
  0x45   :  { %v3034_v4 = vpack.c.bf16 %v79_v2, %v75_v1  ;;  %v78_v7 = vld [vmem:[#allocation7 + $0x20] sm:$0xff]  ;;  %v3036_v8 = vpack.c.bf16 %v81_v5, %v77_v3  ;;  %v76_v10 = vld [vmem:[#allocation7 + $0x10] sm:$0xff]  ;;  %v83_v12 = vld [vmem:[#allocation7 + $0x48] sm:$0xff]  ;;  %vm1876_vm1 = vcmask 1041408   ;;  %s2056_s30 = sld [smem:[#allocation3 + $0x3]]  ;;  %vm1878_vm2 = vcmask 1042432  }
  0x46   :  { %v3038_v9 = vpack.c.bf16 %v78_v7, %v74_v6  ;;  %v80_v11 = vld [vmem:[#allocation7 + $0x30] sm:$0xff]  ;;  %v87_v14 = vld [vmem:[#allocation7 + $0x68] sm:$0xff]  ;;  %v85_v15 = vld [vmem:[#allocation7 + $0x58] sm:$0xff]  ;;  %s2062_s0 = sld [smem:[#allocation3 + $0x4]]  ;;  %vm1880_vm3 = vcmask 1043456   ;;  %vm1882_vm4 = vcmask 1044480  }
  0x47   :  { %2148 = vmatprep.subr.bf16.mxu0 %v3034_v4  ;;  %v3041_v13 = vpack.c.bf16 %v80_v11, %v76_v10  ;;  %v89_v16 = vld [vmem:[#allocation7 + $0x78] sm:$0xff]  ;;  %2180 = vmatprep.subr.bf16.mxu1 %v3036_v8  ;;  %v3045_v17 = vpack.c.bf16 %v87_v14, %v83_v12  ;;  %v82_v19 = vld [vmem:[#allocation7 + $0x40] sm:$0xff]  ;;  %v84_v21 = vld [vmem:[#allocation7 + $0x50] sm:$0xff]  ;;  %vm1884_vm5 = vcmask 1045504   ;;  %vm2945_vm6 = vmmov 0  }
  0x48   :  { %2150 = vmatpush1.bf16.msra.mxu0 %v3038_v9  ;;  %v3047_v18 = vpack.c.bf16 %v89_v16, %v85_v15  ;;  %v86_v20 = vld [vmem:[#allocation7 + $0x60] sm:$0xff]  ;;  %v88_v23 = vld [vmem:[#allocation7 + $0x70] sm:$0xff]  ;;  %v91_v24 = vld [vmem:[#allocation7 + $0x88] sm:$0xff]  ;;  %vm1886_vm7 = vcmask 1046528  }
  0x49   :  { %2182 = vmatpush1.bf16.msra.mxu1 %v3041_v13  ;;  %v3050_v22 = vpack.c.bf16 %v86_v20, %v82_v19  ;;  %v95_v25 = vld [vmem:[#allocation7 + $0xa8] sm:$0xff]  ;;  %2152 = vmatprep.subr.bf16.mxu0 %v3045_v17  ;;  %v3054_v26 = vpack.c.bf16 %v88_v23, %v84_v21  ;;  %v93_v28 = vld [vmem:[#allocation7 + $0x98] sm:$0xff]  ;;  %v90_v30 = vld [vmem:[#allocation7 + $0x80] sm:$0xff]  ;;  %s65_s14 = sshra.s32 %s64_s3, 3  ;;  %s68_s15 = sand.u32 7, %s64_s3 }
  0x4a   :  { %2184 = vmatprep.subr.bf16.mxu1 %v3047_v18  ;;  %v3056_v27 = vpack.c.bf16 %v95_v25, %v91_v24  ;;  %v97_v29 = vld [vmem:[#allocation7 + $0xb8] sm:$0xff]  ;;  %v94_v32 = vld [vmem:[#allocation7 + $0xa0] sm:$0xff]  ;;  %v92_v33 = vld [vmem:[#allocation7 + $0x90] sm:$0xff]  ;;  %s2087_s16 = sshll.u32 %s65_s14, 5  ;;  %s342_s20 = sshra.s32 %s2044_s19, 3 }
  0x4b   :  { %v3058_v31 = vpack.c.bf16 %v97_v29, %v93_v28  ;;  %v96_v34 = vld [vmem:[#allocation7 + $0xb0] sm:$0xff]  ;;  %v3061_v35 = vpack.c.bf16 %v94_v32, %v90_v30  ;;  %v99_v36 = vld [vmem:[#allocation7 + $0xc8] sm:$0xff]  ;;  %v101_v38 = vld [vmem:[#allocation7 + $0xd8] sm:$0xff]  ;;  %s71_s17 = sadd.s32 %s2087_s16, %s68_s15  ;;  %s345_s21 = sand.u32 7, %s2044_s19 }
  0x4c   :  { %2154 = vmatpush1.bf16.msra.mxu0 %v3050_v22  ;;  %v103_v37 = vld [vmem:[#allocation7 + $0xe8] sm:$0xff]  ;;  %v3065_v39 = vpack.c.bf16 %v96_v34, %v92_v33  ;;  %v105_v41 = vld [vmem:[#allocation7 + $0xf8] sm:$0xff]  ;;  %v98_v42 = vld [vmem:[#allocation7 + $0xc0] sm:$0xff]  ;;  %s72_s18 = scalar_lea.vmem [#allocation4], %s71_s17  ;;  %s2088_s22 = sshll.u32 %s342_s20, 5 }
  0x4d   :  { %2186 = vmatpush1.bf16.msra.mxu1 %v3054_v26  ;;  %2156 = vmatprep.subr.bf16.mxu0 %v3056_v27  ;;  %v3067_v40 = vpack.c.bf16 %v103_v37, %v99_v36  ;;  %v102_v43 = vld [vmem:[#allocation7 + $0xe0] sm:$0xff]  ;;  %v3070_v44 = vpack.c.bf16 %v105_v41, %v101_v38  ;;  %v100_v45 = vld [vmem:[#allocation7 + $0xd0] sm:$0xff]  ;;  %v107_v47 = vld [vmem:[#allocation7 + $0x108] sm:$0xff]  ;;  %s348_s23 = sadd.s32 %s2088_s22, %s345_s21  ;;  %s555_s2 = sshra.s32 %s2050_s25, 3 }
  0x4e   :  { %2188 = vmatprep.subr.bf16.mxu1 %v3058_v31  ;;  %v104_v46 = vld [vmem:[#allocation7 + $0xf0] sm:$0xff]  ;;  %v111_v48 = vld [vmem:[#allocation7 + $0x128] sm:$0xff]  ;;  %v109_v49 = vld [vmem:[#allocation7 + $0x118] sm:$0xff]  ;;  %v3073_v51 = vpack.c.bf16 %v102_v43, %v98_v42  ;;  %s349_s24 = scalar_lea.vmem [#allocation4], %s348_s23  ;;  %s558_s26 = sand.u32 7, %s2050_s25 }
  0x4f   :  { %v113_v50 = vld [vmem:[#allocation7 + $0x138] sm:$0xff]  ;;  %v3077_v52 = vpack.c.bf16 %v104_v46, %v100_v45  ;;  %v3079_v53 = vpack.c.bf16 %v111_v48, %v107_v47  ;;  %v106_v54 = vld [vmem:[#allocation7 + $0x100] sm:$0xff]  ;;  %v108_v56 = vld [vmem:[#allocation7 + $0x110] sm:$0xff]  ;;  %v2943_v48 = vmov 1966171168   ;;  %s2089_s27 = sshll.u32 %s555_s2, 5 }
  0x50   :  { %2158 = vmatpush1.bf16.msra.mxu0 %v3061_v35  ;;  %v110_v55 = vld [vmem:[#allocation7 + $0x120] sm:$0xff]  ;;  %v3082_v57 = vpack.c.bf16 %v113_v50, %v109_v49  ;;  %v112_v58 = vld [vmem:[#allocation7 + $0x130] sm:$0xff]  ;;  %v115_v59 = vld [vmem:[#allocation7 + $0x148] sm:$0xff]  ;;  %v287_v49 = vunpack.c.l.s4 %v2943_v48  ;;  %v289_v50 = vlaneseq  ;;  %s561_s28 = sadd.s32 %s2089_s27, %s558_s26  ;;  %s768_s7 = sshra.s32 %s2056_s30, 3 }
  0x51   :  { %2190 = vmatpush1.bf16.msra.mxu1 %v3065_v39  ;;  %2160 = vmatprep.subr.bf16.mxu0 %v3067_v40  ;;  %v119_v60 = vld [vmem:[#allocation7 + $0x168] sm:$0xff]  ;;  %v117_v61 = vld [vmem:[#allocation7 + $0x158] sm:$0xff]  ;;  %v3085_v63 = vpack.c.bf16 %v110_v55, %v106_v54  ;;  %v3089_v1 = vpack.c.bf16 %v112_v58, %v108_v56  ;;  %v114_v3 = vld [vmem:[#allocation7 + $0x140] sm:$0xff]  ;;  %s562_s29 = scalar_lea.vmem [#allocation4], %s561_s28  ;;  %s771_s8 = sand.u32 7, %s2056_s30 }
  0x52   :  { %2192 = vmatprep.subr.bf16.mxu1 %v3070_v44  ;;  %v121_v62 = vld [vmem:[#allocation7 + $0x178] sm:$0xff]  ;;  %v3091_v2 = vpack.c.bf16 %v119_v60, %v115_v59  ;;  %v118_v5 = vld [vmem:[#allocation7 + $0x160] sm:$0xff]  ;;  %v116_v6 = vld [vmem:[#allocation7 + $0x150] sm:$0xff]  ;;  %v288_v54 = vunpack.c.0.s8 %v287_v49  ;;  %v3169_v55 = vshrl.u32 %v289_v50, 7  ;;  %s2090_s9 = sshll.u32 %s768_s7, 5  ;;  %s981_s1 = sshra.s32 %s2062_s0, 3 }
  0x53   :  { %v3094_v7 = vpack.c.bf16 %v121_v62, %v117_v61  ;;  %v120_v10 = vld [vmem:[#allocation7 + $0x170] sm:$0xff]  ;;  %v123_v11 = vld [vmem:[#allocation7 + $0x188] sm:$0xff]  ;;  %v125_v14 = vld [vmem:[#allocation7 + $0x198] sm:$0xff]  ;;  %v3097_v16 = vpack.c.bf16 %v118_v5, %v114_v3  ;;  %s774_s10 = sadd.s32 %s2090_s9, %s771_s8  ;;  %s984_s6 = sand.u32 7, %s2062_s0 }
  0x54   :  { %2162 = vmatpush1.bf16.msra.mxu0 %v3073_v51  ;;  %v127_v12 = vld [vmem:[#allocation7 + $0x1a8] sm:$0xff]  ;;  %v129_v15 = vld [vmem:[#allocation7 + $0x1b8] sm:$0xff]  ;;  %v3101_v19 = vpack.c.bf16 %v120_v10, %v116_v6  ;;  %v122_v21 = vld [vmem:[#allocation7 + $0x180] sm:$0xff]  ;;  %v3172_v58 = vsub.s32 %v288_v54, %v3169_v55  ;;  %s775_s11 = scalar_lea.vmem [#allocation4], %s774_s10  ;;  %s2091_s12 = sshll.u32 %s981_s1, 5 }
  0x55   :  { %2194 = vmatpush1.bf16.msra.mxu1 %v3077_v52  ;;  %2164 = vmatprep.subr.bf16.mxu0 %v3079_v53  ;;  %v3103_v20 = vpack.c.bf16 %v127_v12, %v123_v11  ;;  %v126_v23 = vld [vmem:[#allocation7 + $0x1a0] sm:$0xff]  ;;  %v124_v24 = vld [vmem:[#allocation7 + $0x190] sm:$0xff]  ;;  %v3106_v25 = vpack.c.bf16 %v129_v15, %v125_v14  ;;  %v131_v29 = vld [vmem:[#allocation7 + $0x1c8] sm:$0xff]  ;;  %s987_s13 = sadd.s32 %s2091_s12, %s984_s6  ;;  %s2068_s14 = sld [smem:[#allocation3 + $0x5]] }
  0x56   :  { %2196 = vmatprep.subr.bf16.mxu1 %v3082_v57  ;;  %v128_v28 = vld [vmem:[#allocation7 + $0x1b0] sm:$0xff]  ;;  %v135_v30 = vld [vmem:[#allocation7 + $0x1e8] sm:$0xff]  ;;  %v133_v32 = vld [vmem:[#allocation7 + $0x1d8] sm:$0xff]  ;;  %v3109_v34 = vpack.c.bf16 %v126_v23, %v122_v21  ;;  %s988_s3 = scalar_lea.vmem [#allocation4], %s987_s13  ;;  %s2074_s20 = sld [smem:[#allocation3 + $0x6]] }
  0x57   :  { %v137_v33 = vld [vmem:[#allocation7 + $0x1f8] sm:$0xff]  ;;  %v3113_v36 = vpack.c.bf16 %v128_v28, %v124_v24  ;;  %v3115_v37 = vpack.c.bf16 %v135_v30, %v131_v29  ;;  %v130_v38 = vld [vmem:[#allocation7 + $0x1c0] sm:$0xff]  ;;  %v132_v43 = vld [vmem:[#allocation7 + $0x1d0] sm:$0xff]  ;;  %s2080_s2 = sld [smem:[#allocation3 + $0x7]]  ;;  %s2946_s9 = smov [#allocation10]  }
  0x58   :  { %2166 = vmatpush1.bf16.msra.mxu0 %v3085_v63  ;;  %v134_v41 = vld [vmem:[#allocation7 + $0x1e0] sm:$0xff]  ;;  %v3118_v42 = vpack.c.bf16 %v137_v33, %v133_v32  ;;  %v136_v45 = vld [vmem:[#allocation7 + $0x1f0] sm:$0xff] }
  0x59   :  { %2198 = vmatpush1.bf16.msra.mxu1 %v3089_v1  ;;  %2168 = vmatprep.subr.bf16.mxu0 %v3091_v2  ;;  %v3121_v46 = vpack.c.bf16 %v134_v41, %v130_v38  ;;  %v3125_v47 = vpack.c.bf16 %v136_v45, %v132_v43  ;;  %v73_v11 = vld [vmem:[%s72_s18] ss:$8 sm:$0xf] }
  0x5a   :  { %2200 = vmatprep.subr.bf16.mxu1 %v3094_v7 }
  0x5b   :  { %s1194_s15 = sshra.s32 %s2068_s14, 3  ;;  %s1197_s16 = sand.u32 7, %s2068_s14 }
  0x5c   :  { %2170 = vmatpush1.bf16.msra.mxu0 %v3097_v16  ;;  %s2092_s17 = sshll.u32 %s1194_s15, 5  ;;  %s1407_s21 = sshra.s32 %s2074_s20, 3 }
  0x5d   :  { %2202 = vmatpush1.bf16.msra.mxu1 %v3101_v19  ;;  %2172 = vmatprep.subr.bf16.mxu0 %v3103_v20  ;;  %s1200_s18 = sadd.s32 %s2092_s17, %s1197_s16  ;;  %s1410_s22 = sand.u32 7, %s2074_s20 }
  0x5e   :  { %2204 = vmatprep.subr.bf16.mxu1 %v3106_v25  ;;  %s1201_s19 = scalar_lea.vmem [#allocation4], %s1200_s18  ;;  %s2093_s23 = sshll.u32 %s1407_s21, 5 }
  0x5f   :  { %s1620_s26 = sshra.s32 %s2080_s2, 3  ;;  %s1623_s27 = sand.u32 7, %s2080_s2 }
  0x60   :  { %2174 = vmatpush1.bf16.msra.mxu0 %v3109_v34  ;;  %s2094_s28 = sshll.u32 %s1620_s26, 5 }
  0x61   :  { %2206 = vmatpush1.bf16.msra.mxu1 %v3113_v36  ;;  %2176 = vmatprep.subr.bf16.mxu0 %v3115_v37 }
  0x62   :  { %2208 = vmatprep.subr.bf16.mxu1 %v3118_v42 }
  0x64   :  { %2178 = vmatpush1.bf16.msra.mxu0 %v3121_v46 }
  0x65   :  { %2210 = vmatpush1.bf16.msra.mxu1 %v3125_v47  ;;  %2212 = vmatprep.subr.bf16.mxu0 %v3034_v4 }
  0x66   :  { %2244 = vmatprep.subr.bf16.mxu1 %v3036_v8 }
  0x67   :  { %203 = vmatmul.mubr.f32.vlgmr.msra.gmra.mrb[0].mxu0 %v2942_v0 }
  0x68   :  { %274 = vmatmul.mubr.f32.vlgmr.msra.gmra.mrb[0].mxu1 %v2942_v0  ;;  %2214 = vmatpush1.bf16.msra.mxu0 %v3038_v9 }
  0x69   :  { %2246 = vmatpush1.bf16.msra.mxu1 %v3041_v13  ;;  %2216 = vmatprep.subr.bf16.mxu0 %v3045_v17 }
  0x6a   :  { %2248 = vmatprep.subr.bf16.mxu1 %v3047_v18  ;;  %415 = vmatprep.mubr.f32.mxu0 %v2942_v0 }
  0x6b   :  { %486 = vmatprep.mubr.f32.mxu1 %v2942_v0 }
  0x6c   :  { %2218 = vmatpush1.bf16.msra.mxu0 %v3050_v22 }
  0x6d   :  { %2250 = vmatpush1.bf16.msra.mxu1 %v3054_v26  ;;  %2220 = vmatprep.subr.bf16.mxu0 %v3056_v27 }
  0x6e   :  { %2252 = vmatprep.subr.bf16.mxu1 %v3058_v31 }
  0x70   :  { %2222 = vmatpush1.bf16.msra.mxu0 %v3061_v35 }
  0x71   :  { %2254 = vmatpush1.bf16.msra.mxu1 %v3065_v39  ;;  %2224 = vmatprep.subr.bf16.mxu0 %v3067_v40 }
  0x72   :  { %2256 = vmatprep.subr.bf16.mxu1 %v3070_v44 }
  0x74   :  { %2226 = vmatpush1.bf16.msra.mxu0 %v3073_v51 }
  0x75   :  { %2258 = vmatpush1.bf16.msra.mxu1 %v3077_v52  ;;  %2228 = vmatprep.subr.bf16.mxu0 %v3079_v53 }
  0x76   :  { %2260 = vmatprep.subr.bf16.mxu1 %v3082_v57 }
  0x78   :  { %2230 = vmatpush1.bf16.msra.mxu0 %v3085_v63 }
  0x79   :  { %2262 = vmatpush1.bf16.msra.mxu1 %v3089_v1  ;;  %2232 = vmatprep.subr.bf16.mxu0 %v3091_v2 }
  0x7a   :  { %2264 = vmatprep.subr.bf16.mxu1 %v3094_v7 }
  0x7c   :  { %2234 = vmatpush1.bf16.msra.mxu0 %v3097_v16 }
  0x7d   :  { %2266 = vmatpush1.bf16.msra.mxu1 %v3101_v19  ;;  %2236 = vmatprep.subr.bf16.mxu0 %v3103_v20 }
  0x7e   :  { %2268 = vmatprep.subr.bf16.mxu1 %v3106_v25 }
  0x80   :  { %2238 = vmatpush1.bf16.msra.mxu0 %v3109_v34 }
  0x81   :  { %2270 = vmatpush1.bf16.msra.mxu1 %v3113_v36  ;;  %2240 = vmatprep.subr.bf16.mxu0 %v3115_v37 }
  0x82   :  { %2272 = vmatprep.subr.bf16.mxu1 %v3118_v42 }
  0x84   :  { %2242 = vmatpush1.bf16.msra.mxu0 %v3121_v46 }
  0x85   :  { %2274 = vmatpush1.bf16.msra.mxu1 %v3125_v47  ;;  %2276 = vmatprep.subr.bf16.mxu0 %v3034_v4 }
  0x86   :  { %2308 = vmatprep.subr.bf16.mxu1 %v3036_v8 }
 0x13a   :  { %v204_v56 = vpop.f32.mrb[0].mxu0 }
 0x13b   :  { %v275_v59 = vpop.f32.mrb[0].mxu1  ;;  %v206_v60 = vpop.f32.mrb[1].mxu0 }
 0x13c   :  { %v284_v61 = vcombine.low %v204_v56, %v206_v60  ;;  %v277_v62 = vpop.f32.mrb[1].mxu1 }
 0x13d   :  { %v285_v3 = vcombine.low %v275_v59, %v277_v62 }
 0x13e   :  { %v292_v5 = vrot.slane %v284_v61, %v3172_v58 }
 0x13f   :  { %v299_v6 = vrot.slane %v285_v3, %v3172_v58 }
 0x141   :  { %v300_v10 = vcombine.low %v292_v5, %v299_v6 }
 0x143   :  { %v307_v12 = vrot.slane %v300_v10, %v3172_v58 }
 0x145   :  { %v309_v14 = vadd.f32 %v307_v12, %v73_v11 }
 0x147   :  { %v2041_v15 = vmul.f32 -1.442695, %v309_v14  ;;  %v317_v21 = vrot.slane %v309_v14, 1  ;;  %v328_v24 = vrot.slane %v309_v14, 3  ;;  %v325_v30 = vrot.slane %v309_v14, 2 }
 0x149   :  { %2696 = vpow2.f32 %v2041_v15  ;;  %v2042_v23 = vmul.f32 -1.442695, %v317_v21  ;;  %v2043_v28 = vmul.f32 -1.442695, %v328_v24 }
 0x14b   :  { %2698 = vpow2.f32 %v2042_v23  ;;  %v350_v23 = vld [vmem:[%s349_s24] ss:$8 sm:$0xf]  ;;  %s1413_s24 = sadd.s32 %s2093_s23, %s1410_s22 }
 0x14c   :  { %2700 = vpow2.f32 %v2043_v28  ;;  %s1414_s25 = scalar_lea.vmem [#allocation4], %s1413_s24 }
 0x153   :  { %v2697_v29 = vpop.eup %2696 }
 0x154   :  { %v313_v32 = vadd.f32 1.0, %v2697_v29 }
 0x155   :  { %v2699_v33 = vpop.eup %2698 }
 0x156   :  { %2702 = vrcp.f32 %v313_v32  ;;  %v322_v38 = vadd.f32 1.0, %v2699_v33  ;;  %v2701_v41 = vpop.eup %2700 }
 0x157   :  { %2704 = vtanh.f32 %v325_v30  ;;  %v333_v49 = vadd.f32 1.0, %v2701_v41 }
 0x158   :  { %2706 = vrcp.f32 %v322_v38 }
 0x159   :  { %2708 = vrcp.f32 %v333_v49 }
 0x160   :  { %v2703_v43 = vpop.eup %2702 }
 0x161   :  { %v2705_v45 = vpop.eup %2704 }
 0x162   :  { %v2707_v48 = vpop.eup %2706  ;;  %v337_v56 = vmul.f32 %v2705_v45, %v2703_v43 }
 0x163   :  { %v336_v54 = vmul.f32 0.0, %v2707_v48  ;;  %v2709_v60 = vpop.eup %2708 }
 0x165   :  { %v3177_v59 = vadd.f32 %v337_v56, %v336_v54 }
 0x167   :  { %2710 = vtanh.f32 %v3177_v59 }
 0x171   :  { %v2711_v61 = vpop.eup %2710 }
 0x172   :  { %v3180_v62 = vmul.f32 %v2711_v61, %v2709_v60 }
 0x174   :  { %416 = vmatmul.mubr.f32.vlgmr.msra.gmra.mrb[2].mxu0 %v3180_v62  ;;  %487 = vmatmul.mubr.f32.vlgmr.msra.gmra.mrb[2].mxu1 %v3180_v62 }
 0x175   :  { %2278 = vmatpush1.bf16.msra.mxu0 %v3038_v9  ;;  %2310 = vmatpush1.bf16.msra.mxu1 %v3041_v13 }
 0x176   :  { %2280 = vmatprep.subr.bf16.mxu0 %v3045_v17  ;;  %2312 = vmatprep.subr.bf16.mxu1 %v3047_v18 }
 0x177   :  { %628 = vmatprep.mubr.f32.mxu0 %v2942_v0  ;;  %699 = vmatprep.mubr.f32.mxu1 %v2942_v0 }
 0x179   :  { %2282 = vmatpush1.bf16.msra.mxu0 %v3050_v22  ;;  %2314 = vmatpush1.bf16.msra.mxu1 %v3054_v26 }
 0x17a   :  { %2284 = vmatprep.subr.bf16.mxu0 %v3056_v27  ;;  %2316 = vmatprep.subr.bf16.mxu1 %v3058_v31 }
 0x17d   :  { %2286 = vmatpush1.bf16.msra.mxu0 %v3061_v35  ;;  %2318 = vmatpush1.bf16.msra.mxu1 %v3065_v39 }
 0x17e   :  { %2288 = vmatprep.subr.bf16.mxu0 %v3067_v40  ;;  %2320 = vmatprep.subr.bf16.mxu1 %v3070_v44 }
 0x181   :  { %2290 = vmatpush1.bf16.msra.mxu0 %v3073_v51  ;;  %2322 = vmatpush1.bf16.msra.mxu1 %v3077_v52 }
 0x182   :  { %2292 = vmatprep.subr.bf16.mxu0 %v3079_v53  ;;  %2324 = vmatprep.subr.bf16.mxu1 %v3082_v57 }
 0x185   :  { %2294 = vmatpush1.bf16.msra.mxu0 %v3085_v63  ;;  %2326 = vmatpush1.bf16.msra.mxu1 %v3089_v1 }
 0x186   :  { %2296 = vmatprep.subr.bf16.mxu0 %v3091_v2  ;;  %2328 = vmatprep.subr.bf16.mxu1 %v3094_v7 }
 0x189   :  { %2298 = vmatpush1.bf16.msra.mxu0 %v3097_v16  ;;  %2330 = vmatpush1.bf16.msra.mxu1 %v3101_v19 }
 0x18a   :  { %2300 = vmatprep.subr.bf16.mxu0 %v3103_v20  ;;  %2332 = vmatprep.subr.bf16.mxu1 %v3106_v25 }
 0x18d   :  { %2302 = vmatpush1.bf16.msra.mxu0 %v3109_v34  ;;  %2334 = vmatpush1.bf16.msra.mxu1 %v3113_v36 }
 0x18e   :  { %2304 = vmatprep.subr.bf16.mxu0 %v3115_v37  ;;  %2336 = vmatprep.subr.bf16.mxu1 %v3118_v42 }
 0x191   :  { %2306 = vmatpush1.bf16.msra.mxu0 %v3121_v46  ;;  %2338 = vmatpush1.bf16.msra.mxu1 %v3125_v47 }
 0x192   :  { %2340 = vmatprep.subr.bf16.mxu0 %v3034_v4  ;;  %2372 = vmatprep.subr.bf16.mxu1 %v3036_v8 }
 0x247   :  { %v417_v3 = vpop.f32.mrb[2].mxu0  ;;  %v488_v5 = vpop.f32.mrb[2].mxu1 }
 0x248   :  { %v419_v6 = vpop.f32.mrb[3].mxu0  ;;  %v490_v10 = vpop.f32.mrb[3].mxu1 }
 0x249   :  { %v497_v11 = vcombine.low %v417_v3, %v419_v6  ;;  %v498_v12 = vcombine.low %v488_v5, %v490_v10 }
 0x24b   :  { %v505_v14 = vrot.slane %v497_v11, %v3172_v58  ;;  %v512_v15 = vrot.slane %v498_v12, %v3172_v58 }
 0x24d   :  { %v513_v21 = vcombine.low %v505_v14, %v512_v15 }
 0x24f   :  { %v520_v24 = vrot.slane %v513_v21, %v3172_v58 }
 0x251   :  { %v522_v28 = vadd.f32 %v520_v24, %v350_v23 }
 0x253   :  { %v2047_v29 = vmul.f32 -1.442695, %v522_v28  ;;  %v530_v30 = vrot.slane %v522_v28, 1  ;;  %v541_v33 = vrot.slane %v522_v28, 3  ;;  %v538_v43 = vrot.slane %v522_v28, 2 }
 0x255   :  { %2712 = vpow2.f32 %v2047_v29  ;;  %v2048_v32 = vmul.f32 -1.442695, %v530_v30  ;;  %v2049_v38 = vmul.f32 -1.442695, %v541_v33 }
 0x256   :  { %v563_v33 = vld [vmem:[%s562_s29] ss:$8 sm:$0xf]  ;;  %s1626_s29 = sadd.s32 %s2094_s28, %s1623_s27 }
 0x257   :  { %2714 = vpow2.f32 %v2048_v32  ;;  %s1627_s30 = scalar_lea.vmem [#allocation4], %s1626_s29 }
 0x258   :  { %2716 = vpow2.f32 %v2049_v38 }
 0x25f   :  { %v2713_v41 = vpop.eup %2712 }
 0x260   :  { %v526_v45 = vadd.f32 1.0, %v2713_v41 }
 0x261   :  { %v2715_v48 = vpop.eup %2714 }
 0x262   :  { %2718 = vrcp.f32 %v526_v45  ;;  %v535_v49 = vadd.f32 1.0, %v2715_v48  ;;  %v2717_v54 = vpop.eup %2716 }
 0x263   :  { %2720 = vtanh.f32 %v538_v43  ;;  %v546_v3 = vadd.f32 1.0, %v2717_v54 }
 0x264   :  { %2722 = vrcp.f32 %v535_v49 }
 0x265   :  { %2724 = vrcp.f32 %v546_v3 }
 0x26c   :  { %v2719_v56 = vpop.eup %2718 }
 0x26d   :  { %v2721_v60 = vpop.eup %2720 }
 0x26e   :  { %v2723_v61 = vpop.eup %2722  ;;  %v550_v6 = vmul.f32 %v2721_v60, %v2719_v56 }
 0x26f   :  { %v549_v5 = vmul.f32 %v2723_v61, %v3177_v59  ;;  %v2725_v11 = vpop.eup %2724 }
 0x271   :  { %v3222_v10 = vadd.f32 %v550_v6, %v549_v5 }
 0x273   :  { %2726 = vtanh.f32 %v3222_v10 }
 0x27d   :  { %v2727_v12 = vpop.eup %2726 }
 0x27e   :  { %v3225_v14 = vmul.f32 %v2727_v12, %v2725_v11 }
 0x280   :  { %629 = vmatmul.mubr.f32.vlgmr.msra.gmra.mrb[4].mxu0 %v3225_v14  ;;  %700 = vmatmul.mubr.f32.vlgmr.msra.gmra.mrb[4].mxu1 %v3225_v14 }
 0x281   :  { %2342 = vmatpush1.bf16.msra.mxu0 %v3038_v9  ;;  %2374 = vmatpush1.bf16.msra.mxu1 %v3041_v13 }
 0x282   :  { %2344 = vmatprep.subr.bf16.mxu0 %v3045_v17  ;;  %2376 = vmatprep.subr.bf16.mxu1 %v3047_v18 }
 0x283   :  { %841 = vmatprep.mubr.f32.mxu0 %v2942_v0  ;;  %912 = vmatprep.mubr.f32.mxu1 %v2942_v0 }
 0x285   :  { %2346 = vmatpush1.bf16.msra.mxu0 %v3050_v22  ;;  %2378 = vmatpush1.bf16.msra.mxu1 %v3054_v26 }
 0x286   :  { %2348 = vmatprep.subr.bf16.mxu0 %v3056_v27  ;;  %2380 = vmatprep.subr.bf16.mxu1 %v3058_v31 }
 0x289   :  { %2350 = vmatpush1.bf16.msra.mxu0 %v3061_v35  ;;  %2382 = vmatpush1.bf16.msra.mxu1 %v3065_v39 }
 0x28a   :  { %2352 = vmatprep.subr.bf16.mxu0 %v3067_v40  ;;  %2384 = vmatprep.subr.bf16.mxu1 %v3070_v44 }
 0x28d   :  { %2354 = vmatpush1.bf16.msra.mxu0 %v3073_v51  ;;  %2386 = vmatpush1.bf16.msra.mxu1 %v3077_v52 }
 0x28e   :  { %2356 = vmatprep.subr.bf16.mxu0 %v3079_v53  ;;  %2388 = vmatprep.subr.bf16.mxu1 %v3082_v57 }
 0x291   :  { %2358 = vmatpush1.bf16.msra.mxu0 %v3085_v63  ;;  %2390 = vmatpush1.bf16.msra.mxu1 %v3089_v1 }
 0x292   :  { %2360 = vmatprep.subr.bf16.mxu0 %v3091_v2  ;;  %2392 = vmatprep.subr.bf16.mxu1 %v3094_v7 }
 0x295   :  { %2362 = vmatpush1.bf16.msra.mxu0 %v3097_v16  ;;  %2394 = vmatpush1.bf16.msra.mxu1 %v3101_v19 }
 0x296   :  { %2364 = vmatprep.subr.bf16.mxu0 %v3103_v20  ;;  %2396 = vmatprep.subr.bf16.mxu1 %v3106_v25 }
 0x299   :  { %2366 = vmatpush1.bf16.msra.mxu0 %v3109_v34  ;;  %2398 = vmatpush1.bf16.msra.mxu1 %v3113_v36 }
 0x29a   :  { %2368 = vmatprep.subr.bf16.mxu0 %v3115_v37  ;;  %2400 = vmatprep.subr.bf16.mxu1 %v3118_v42 }
 0x29d   :  { %2370 = vmatpush1.bf16.msra.mxu0 %v3121_v46  ;;  %2402 = vmatpush1.bf16.msra.mxu1 %v3125_v47 }
 0x29e   :  { %2404 = vmatprep.subr.bf16.mxu0 %v3034_v4  ;;  %2436 = vmatprep.subr.bf16.mxu1 %v3036_v8 }
 0x353   :  { %v630_v59 = vpop.f32.mrb[4].mxu0  ;;  %v701_v15 = vpop.f32.mrb[4].mxu1 }
 0x354   :  { %v632_v21 = vpop.f32.mrb[5].mxu0  ;;  %v703_v23 = vpop.f32.mrb[5].mxu1 }
 0x355   :  { %v710_v24 = vcombine.low %v630_v59, %v632_v21  ;;  %v711_v28 = vcombine.low %v701_v15, %v703_v23 }
 0x357   :  { %v718_v29 = vrot.slane %v710_v24, %v3172_v58  ;;  %v725_v30 = vrot.slane %v711_v28, %v3172_v58  ;;  %v3271_v28 = vsub.s32 0, %v3169_v55 }
 0x359   :  { %v726_v32 = vcombine.low %v718_v29, %v725_v30 }
 0x35b   :  { %v733_v38 = vrot.slane %v726_v32, %v3172_v58  ;;  %v1836_v32 = vrot.slane %v3225_v14, %v3271_v28 }
 0x35d   :  { %v735_v41 = vadd.f32 %v733_v38, %v563_v33  ;;  %v1875_v38 = vsel %vm1874_vm0, %v3180_v62, %v1836_v32 }
 0x35f   :  { %v2053_v43 = vmul.f32 -1.442695, %v735_v41  ;;  %v743_v45 = vrot.slane %v735_v41, 1  ;;  %v754_v49 = vrot.slane %v735_v41, 3  ;;  %v751_v60 = vrot.slane %v735_v41, 2 }
 0x361   :  { %2728 = vpow2.f32 %v2053_v43  ;;  %v2054_v48 = vmul.f32 -1.442695, %v743_v45  ;;  %v2055_v54 = vmul.f32 -1.442695, %v754_v49 }
 0x363   :  { %2730 = vpow2.f32 %v2054_v48 }
 0x364   :  { %2732 = vpow2.f32 %v2055_v54 }
 0x36b   :  { %v2729_v56 = vpop.eup %2728 }
 0x36c   :  { %v739_v61 = vadd.f32 1.0, %v2729_v56 }
 0x36d   :  { %v2731_v3 = vpop.eup %2730 }
 0x36e   :  { %2734 = vrcp.f32 %v739_v61  ;;  %v748_v5 = vadd.f32 1.0, %v2731_v3  ;;  %v2733_v6 = vpop.eup %2732 }
 0x36f   :  { %2736 = vtanh.f32 %v751_v60  ;;  %v759_v15 = vadd.f32 1.0, %v2733_v6  ;;  %v776_v60 = vld [vmem:[%s775_s11] ss:$8 sm:$0xf] }
 0x370   :  { %2738 = vrcp.f32 %v748_v5 }
 0x371   :  { %2740 = vrcp.f32 %v759_v15 }
 0x378   :  { %v2735_v11 = vpop.eup %2734 }
 0x379   :  { %v2737_v12 = vpop.eup %2736 }
 0x37a   :  { %v2739_v59 = vpop.eup %2738  ;;  %v763_v23 = vmul.f32 %v2737_v12, %v2735_v11 }
 0x37b   :  { %v762_v21 = vmul.f32 %v2739_v59, %v3222_v10  ;;  %v2741_v29 = vpop.eup %2740 }
 0x37d   :  { %v3267_v24 = vadd.f32 %v763_v23, %v762_v21 }
 0x37f   :  { %2742 = vtanh.f32 %v3267_v24 }
 0x389   :  { %v2743_v30 = vpop.eup %2742 }
 0x38a   :  { %v766_v33 = vmul.f32 %v2743_v30, %v2741_v29 }
 0x38c   :  { %842 = vmatmul.mubr.f32.vlgmr.msra.gmra.mrb[6].mxu0 %v766_v33  ;;  %v1842_v10 = vrot.slane %v766_v33, %v3271_v28  ;;  %913 = vmatmul.mubr.f32.vlgmr.msra.gmra.mrb[6].mxu1 %v766_v33 }
 0x38d   :  { %2406 = vmatpush1.bf16.msra.mxu0 %v3038_v9  ;;  %2438 = vmatpush1.bf16.msra.mxu1 %v3041_v13 }
 0x38e   :  { %2408 = vmatprep.subr.bf16.mxu0 %v3045_v17  ;;  %2440 = vmatprep.subr.bf16.mxu1 %v3047_v18  ;;  %v3281_v55 = vsel %vm1876_vm1, %v1875_v38, %v1842_v10 }
 0x38f   :  { %1054 = vmatprep.mubr.f32.mxu0 %v2942_v0  ;;  %1125 = vmatprep.mubr.f32.mxu1 %v2942_v0 }
 0x391   :  { %2410 = vmatpush1.bf16.msra.mxu0 %v3050_v22  ;;  %2442 = vmatpush1.bf16.msra.mxu1 %v3054_v26 }
 0x392   :  { %2412 = vmatprep.subr.bf16.mxu0 %v3056_v27  ;;  %2444 = vmatprep.subr.bf16.mxu1 %v3058_v31 }
 0x395   :  { %2414 = vmatpush1.bf16.msra.mxu0 %v3061_v35  ;;  %2446 = vmatpush1.bf16.msra.mxu1 %v3065_v39 }
 0x396   :  { %2416 = vmatprep.subr.bf16.mxu0 %v3067_v40  ;;  %2448 = vmatprep.subr.bf16.mxu1 %v3070_v44 }
 0x399   :  { %2418 = vmatpush1.bf16.msra.mxu0 %v3073_v51  ;;  %2450 = vmatpush1.bf16.msra.mxu1 %v3077_v52 }
 0x39a   :  { %2420 = vmatprep.subr.bf16.mxu0 %v3079_v53  ;;  %2452 = vmatprep.subr.bf16.mxu1 %v3082_v57 }
 0x39d   :  { %2422 = vmatpush1.bf16.msra.mxu0 %v3085_v63  ;;  %2454 = vmatpush1.bf16.msra.mxu1 %v3089_v1 }
 0x39e   :  { %2424 = vmatprep.subr.bf16.mxu0 %v3091_v2  ;;  %2456 = vmatprep.subr.bf16.mxu1 %v3094_v7 }
 0x3a1   :  { %2426 = vmatpush1.bf16.msra.mxu0 %v3097_v16  ;;  %2458 = vmatpush1.bf16.msra.mxu1 %v3101_v19 }
 0x3a2   :  { %2428 = vmatprep.subr.bf16.mxu0 %v3103_v20  ;;  %2460 = vmatprep.subr.bf16.mxu1 %v3106_v25 }
 0x3a5   :  { %2430 = vmatpush1.bf16.msra.mxu0 %v3109_v34  ;;  %2462 = vmatpush1.bf16.msra.mxu1 %v3113_v36 }
 0x3a6   :  { %2432 = vmatprep.subr.bf16.mxu0 %v3115_v37  ;;  %2464 = vmatprep.subr.bf16.mxu1 %v3118_v42 }
 0x3a9   :  { %2434 = vmatpush1.bf16.msra.mxu0 %v3121_v46  ;;  %2466 = vmatpush1.bf16.msra.mxu1 %v3125_v47 }
 0x3aa   :  { %2468 = vmatprep.subr.bf16.mxu0 %v3034_v4  ;;  %2500 = vmatprep.subr.bf16.mxu1 %v3036_v8 }
 0x45f   :  { %v843_v62 = vpop.f32.mrb[6].mxu0  ;;  %v914_v14 = vpop.f32.mrb[6].mxu1 }
 0x460   :  { %v845_v41 = vpop.f32.mrb[7].mxu0  ;;  %v916_v43 = vpop.f32.mrb[7].mxu1 }
 0x461   :  { %v923_v45 = vcombine.low %v843_v62, %v845_v41  ;;  %v924_v48 = vcombine.low %v914_v14, %v916_v43 }
 0x463   :  { %v931_v49 = vrot.slane %v923_v45, %v3172_v58  ;;  %v938_v54 = vrot.slane %v924_v48, %v3172_v58 }
 0x465   :  { %v939_v56 = vcombine.low %v931_v49, %v938_v54 }
 0x467   :  { %v946_v61 = vrot.slane %v939_v56, %v3172_v58 }
 0x469   :  { %v948_v3 = vadd.f32 %v946_v61, %v776_v60 }
 0x46b   :  { %v2059_v5 = vmul.f32 -1.442695, %v948_v3  ;;  %v956_v6 = vrot.slane %v948_v3, 1  ;;  %v967_v12 = vrot.slane %v948_v3, 3  ;;  %v964_v21 = vrot.slane %v948_v3, 2 }
 0x46d   :  { %2744 = vpow2.f32 %v2059_v5  ;;  %v2060_v11 = vmul.f32 -1.442695, %v956_v6  ;;  %v2061_v59 = vmul.f32 -1.442695, %v967_v12 }
 0x46f   :  { %2746 = vpow2.f32 %v2060_v11 }
 0x470   :  { %2748 = vpow2.f32 %v2061_v59  ;;  %v989_v59 = vld [vmem:[%s988_s3] ss:$8 sm:$0xf] }
 0x477   :  { %v2745_v15 = vpop.eup %2744 }
 0x478   :  { %v952_v23 = vadd.f32 1.0, %v2745_v15 }
 0x479   :  { %v2747_v29 = vpop.eup %2746 }
 0x47a   :  { %2750 = vrcp.f32 %v952_v23  ;;  %v961_v30 = vadd.f32 1.0, %v2747_v29  ;;  %v2749_v32 = vpop.eup %2748 }
 0x47b   :  { %2752 = vtanh.f32 %v964_v21  ;;  %v972_v62 = vadd.f32 1.0, %v2749_v32 }
 0x47c   :  { %2754 = vrcp.f32 %v961_v30 }
 0x47d   :  { %2756 = vrcp.f32 %v972_v62 }
 0x484   :  { %v2751_v33 = vpop.eup %2750 }
 0x485   :  { %v2753_v10 = vpop.eup %2752 }
 0x486   :  { %v2755_v38 = vpop.eup %2754  ;;  %v976_v41 = vmul.f32 %v2753_v10, %v2751_v33 }
 0x487   :  { %v975_v14 = vmul.f32 %v2755_v38, %v3267_v24  ;;  %v2757_v45 = vpop.eup %2756 }
 0x489   :  { %v3317_v43 = vadd.f32 %v976_v41, %v975_v14 }
 0x48b   :  { %2758 = vtanh.f32 %v3317_v43 }
 0x495   :  { %v2759_v48 = vpop.eup %2758 }
 0x496   :  { %v979_v49 = vmul.f32 %v2759_v48, %v2757_v45 }
 0x498   :  { %1055 = vmatmul.mubr.f32.vlgmr.msra.gmra.mrb[8].mxu0 %v979_v49  ;;  %v1848_v54 = vrot.slane %v979_v49, %v3271_v28  ;;  %1126 = vmatmul.mubr.f32.vlgmr.msra.gmra.mrb[8].mxu1 %v979_v49 }
 0x499   :  { %2470 = vmatpush1.bf16.msra.mxu0 %v3038_v9  ;;  %2502 = vmatpush1.bf16.msra.mxu1 %v3041_v13 }
 0x49a   :  { %2472 = vmatprep.subr.bf16.mxu0 %v3045_v17  ;;  %2504 = vmatprep.subr.bf16.mxu1 %v3047_v18  ;;  %v3326_v24 = vsel %vm1878_vm2, %v3281_v55, %v1848_v54 }
 0x49b   :  { %1267 = vmatprep.mubr.f32.mxu0 %v2942_v0  ;;  %1338 = vmatprep.mubr.f32.mxu1 %v2942_v0 }
 0x49d   :  { %2474 = vmatpush1.bf16.msra.mxu0 %v3050_v22  ;;  %2506 = vmatpush1.bf16.msra.mxu1 %v3054_v26 }
 0x49e   :  { %2476 = vmatprep.subr.bf16.mxu0 %v3056_v27  ;;  %2508 = vmatprep.subr.bf16.mxu1 %v3058_v31 }
 0x4a1   :  { %2478 = vmatpush1.bf16.msra.mxu0 %v3061_v35  ;;  %2510 = vmatpush1.bf16.msra.mxu1 %v3065_v39 }
 0x4a2   :  { %2480 = vmatprep.subr.bf16.mxu0 %v3067_v40  ;;  %2512 = vmatprep.subr.bf16.mxu1 %v3070_v44 }
 0x4a5   :  { %2482 = vmatpush1.bf16.msra.mxu0 %v3073_v51  ;;  %2514 = vmatpush1.bf16.msra.mxu1 %v3077_v52 }
 0x4a6   :  { %2484 = vmatprep.subr.bf16.mxu0 %v3079_v53  ;;  %2516 = vmatprep.subr.bf16.mxu1 %v3082_v57 }
 0x4a9   :  { %2486 = vmatpush1.bf16.msra.mxu0 %v3085_v63  ;;  %2518 = vmatpush1.bf16.msra.mxu1 %v3089_v1 }
 0x4aa   :  { %2488 = vmatprep.subr.bf16.mxu0 %v3091_v2  ;;  %2520 = vmatprep.subr.bf16.mxu1 %v3094_v7 }
 0x4ad   :  { %2490 = vmatpush1.bf16.msra.mxu0 %v3097_v16  ;;  %2522 = vmatpush1.bf16.msra.mxu1 %v3101_v19 }
 0x4ae   :  { %2492 = vmatprep.subr.bf16.mxu0 %v3103_v20  ;;  %2524 = vmatprep.subr.bf16.mxu1 %v3106_v25 }
 0x4b1   :  { %2494 = vmatpush1.bf16.msra.mxu0 %v3109_v34  ;;  %2526 = vmatpush1.bf16.msra.mxu1 %v3113_v36 }
 0x4b2   :  { %2496 = vmatprep.subr.bf16.mxu0 %v3115_v37  ;;  %2528 = vmatprep.subr.bf16.mxu1 %v3118_v42 }
 0x4b5   :  { %2498 = vmatpush1.bf16.msra.mxu0 %v3121_v46  ;;  %2530 = vmatpush1.bf16.msra.mxu1 %v3125_v47 }
 0x4b6   :  { %2532 = vmatprep.subr.bf16.mxu0 %v3034_v4  ;;  %2564 = vmatprep.subr.bf16.mxu1 %v3036_v8 }
 0x56b   :  { %v1056_v55 = vpop.f32.mrb[8].mxu0  ;;  %v1127_v56 = vpop.f32.mrb[8].mxu1 }
 0x56c   :  { %v1058_v60 = vpop.f32.mrb[9].mxu0  ;;  %v1129_v61 = vpop.f32.mrb[9].mxu1 }
 0x56d   :  { %v1136_v3 = vcombine.low %v1056_v55, %v1058_v60  ;;  %v1137_v5 = vcombine.low %v1127_v56, %v1129_v61 }
 0x56f   :  { %v1144_v6 = vrot.slane %v1136_v3, %v3172_v58  ;;  %v1151_v11 = vrot.slane %v1137_v5, %v3172_v58 }
 0x571   :  { %v1152_v12 = vcombine.low %v1144_v6, %v1151_v11 }
 0x573   :  { %v1159_v15 = vrot.slane %v1152_v12, %v3172_v58 }
 0x575   :  { %v1161_v21 = vadd.f32 %v1159_v15, %v989_v59 }
 0x577   :  { %v2065_v23 = vmul.f32 -1.442695, %v1161_v21  ;;  %v1169_v29 = vrot.slane %v1161_v21, 1  ;;  %v1180_v32 = vrot.slane %v1161_v21, 3  ;;  %v1177_v38 = vrot.slane %v1161_v21, 2 }
 0x579   :  { %2760 = vpow2.f32 %v2065_v23  ;;  %v2066_v30 = vmul.f32 -1.442695, %v1169_v29  ;;  %v2067_v33 = vmul.f32 -1.442695, %v1180_v32 }
 0x57b   :  { %2762 = vpow2.f32 %v2066_v30 }
 0x57c   :  { %2764 = vpow2.f32 %v2067_v33 }
 0x583   :  { %v2761_v10 = vpop.eup %2760 }
 0x584   :  { %v1165_v62 = vadd.f32 1.0, %v2761_v10 }
 0x585   :  { %v2763_v14 = vpop.eup %2762 }
 0x586   :  { %2766 = vrcp.f32 %v1165_v62  ;;  %v1174_v41 = vadd.f32 1.0, %v2763_v14  ;;  %v2765_v45 = vpop.eup %2764 }
 0x587   :  { %2768 = vtanh.f32 %v1177_v38  ;;  %v1185_v55 = vadd.f32 1.0, %v2765_v45 }
 0x588   :  { %2770 = vrcp.f32 %v1174_v41 }
 0x589   :  { %2772 = vrcp.f32 %v1185_v55 }
 0x590   :  { %v2767_v48 = vpop.eup %2766 }
 0x591   :  { %v2769_v49 = vpop.eup %2768 }
 0x592   :  { %v2771_v54 = vpop.eup %2770  ;;  %v1189_v60 = vmul.f32 %v2769_v49, %v2767_v48 }
 0x593   :  { %v1188_v56 = vmul.f32 %v2771_v54, %v3317_v43  ;;  %v2773_v3 = vpop.eup %2772 }
 0x595   :  { %v3362_v61 = vadd.f32 %v1189_v60, %v1188_v56 }
 0x597   :  { %2774 = vtanh.f32 %v3362_v61 }
 0x5a1   :  { %v2775_v5 = vpop.eup %2774 }
 0x5a2   :  { %v1192_v6 = vmul.f32 %v2775_v5, %v2773_v3 }
 0x5a4   :  { %1268 = vmatmul.mubr.f32.vlgmr.msra.gmra.mrb[10].mxu0 %v1192_v6  ;;  %v1854_v11 = vrot.slane %v1192_v6, %v3271_v28  ;;  %1339 = vmatmul.mubr.f32.vlgmr.msra.gmra.mrb[10].mxu1 %v1192_v6 }
 0x5a5   :  { %2534 = vmatpush1.bf16.msra.mxu0 %v3038_v9  ;;  %2566 = vmatpush1.bf16.msra.mxu1 %v3041_v13 }
 0x5a6   :  { %2536 = vmatprep.subr.bf16.mxu0 %v3045_v17  ;;  %2568 = vmatprep.subr.bf16.mxu1 %v3047_v18  ;;  %v3371_v43 = vsel %vm1880_vm3, %v3326_v24, %v1854_v11 }
 0x5a7   :  { %1480 = vmatprep.mubr.f32.mxu0 %v2942_v0  ;;  %1551 = vmatprep.mubr.f32.mxu1 %v2942_v0 }
 0x5a9   :  { %2538 = vmatpush1.bf16.msra.mxu0 %v3050_v22  ;;  %2570 = vmatpush1.bf16.msra.mxu1 %v3054_v26 }
 0x5aa   :  { %2540 = vmatprep.subr.bf16.mxu0 %v3056_v27  ;;  %2572 = vmatprep.subr.bf16.mxu1 %v3058_v31 }
 0x5ad   :  { %2542 = vmatpush1.bf16.msra.mxu0 %v3061_v35  ;;  %2574 = vmatpush1.bf16.msra.mxu1 %v3065_v39 }
 0x5ae   :  { %2544 = vmatprep.subr.bf16.mxu0 %v3067_v40  ;;  %2576 = vmatprep.subr.bf16.mxu1 %v3070_v44 }
 0x5b1   :  { %2546 = vmatpush1.bf16.msra.mxu0 %v3073_v51  ;;  %2578 = vmatpush1.bf16.msra.mxu1 %v3077_v52 }
 0x5b2   :  { %2548 = vmatprep.subr.bf16.mxu0 %v3079_v53  ;;  %2580 = vmatprep.subr.bf16.mxu1 %v3082_v57 }
 0x5b5   :  { %2550 = vmatpush1.bf16.msra.mxu0 %v3085_v63  ;;  %2582 = vmatpush1.bf16.msra.mxu1 %v3089_v1 }
 0x5b6   :  { %2552 = vmatprep.subr.bf16.mxu0 %v3091_v2  ;;  %2584 = vmatprep.subr.bf16.mxu1 %v3094_v7 }
 0x5b9   :  { %2554 = vmatpush1.bf16.msra.mxu0 %v3097_v16  ;;  %2586 = vmatpush1.bf16.msra.mxu1 %v3101_v19 }
 0x5ba   :  { %2556 = vmatprep.subr.bf16.mxu0 %v3103_v20  ;;  %2588 = vmatprep.subr.bf16.mxu1 %v3106_v25 }
 0x5bd   :  { %2558 = vmatpush1.bf16.msra.mxu0 %v3109_v34  ;;  %2590 = vmatpush1.bf16.msra.mxu1 %v3113_v36 }
 0x5be   :  { %2560 = vmatprep.subr.bf16.mxu0 %v3115_v37  ;;  %2592 = vmatprep.subr.bf16.mxu1 %v3118_v42 }
 0x5c1   :  { %2562 = vmatpush1.bf16.msra.mxu0 %v3121_v46  ;;  %2594 = vmatpush1.bf16.msra.mxu1 %v3125_v47 }
 0x5c2   :  { %2596 = vmatprep.subr.bf16.mxu0 %v3034_v4  ;;  %2628 = vmatprep.subr.bf16.mxu1 %v3036_v8  ;;  %v1202_v4 = vld [vmem:[%s1201_s19] ss:$8 sm:$0xf] }
 0x677   :  { %v1269_v24 = vpop.f32.mrb[10].mxu0  ;;  %v1340_v12 = vpop.f32.mrb[10].mxu1 }
 0x678   :  { %v1271_v59 = vpop.f32.mrb[11].mxu0  ;;  %v1342_v15 = vpop.f32.mrb[11].mxu1 }
 0x679   :  { %v1349_v21 = vcombine.low %v1269_v24, %v1271_v59  ;;  %v1350_v23 = vcombine.low %v1340_v12, %v1342_v15 }
 0x67b   :  { %v1357_v29 = vrot.slane %v1349_v21, %v3172_v58  ;;  %v1364_v30 = vrot.slane %v1350_v23, %v3172_v58 }
 0x67d   :  { %v1365_v32 = vcombine.low %v1357_v29, %v1364_v30 }
 0x67f   :  { %v1372_v8 = vrot.slane %v1365_v32, %v3172_v58 }
 0x681   :  { %v1374_v33 = vadd.f32 %v1372_v8, %v1202_v4  ;;  %v1888_v8 = vld [vmem:[#allocation9] sm:$0xff] }
 0x683   :  { %v2071_v10 = vmul.f32 -1.442695, %v1374_v33  ;;  %v1382_v38 = vrot.slane %v1374_v33, 1  ;;  %v1393_v14 = vrot.slane %v1374_v33, 3  ;;  %v1390_v48 = vrot.slane %v1374_v33, 2  ;;  %v1889_v33 = vld [vmem:[#allocation9 + $0x8] sm:$0xff] }
 0x685   :  { %2776 = vpow2.f32 %v2071_v10  ;;  %v2072_v62 = vmul.f32 -1.442695, %v1382_v38  ;;  %v2073_v41 = vmul.f32 -1.442695, %v1393_v14  ;;  %v2660_v10 = vpack.c.bf16 %v1889_v33, %v1888_v8  ;;  %v1891_v14 = vld [vmem:[#allocation9 + $0x18] sm:$0xff] }
 0x686   :  { %v2944_v38 = vmov 0.0|0.0   ;;  %v1982_v8 = vand.u32 127, %v289_v50  ;;  %v2086_v33 = vld [vmem:[%s3484_s4] ss:$0 sm:$0xff]  ;;  %s2005_s4 = sshll.u32 %s2946_s9, 4  ;;  %s2006_s4 = int_to_ptr.vmem [resolvable:$true] %s2005_s4 }
 0x687   :  { %2778 = vpow2.f32 %v2072_v62  ;;  %v1890_v62 = vld [vmem:[#allocation9 + $0x10] sm:$0xff]  ;;  %s2904_s10 = scalar_lea.vmem %s2006_s4, 128  ;;  %p2909_p0 = scmp.lt.s32.totalorder %s2006_s4, %s2006_s4 }
 0x688   :  { %2780 = vpow2.f32 %v2073_v41  ;;  %v2663_v41 = vpack.c.bf16 %v1891_v14, %v1890_v62  ;;  %vm1983_vm8 = vcmp.lt.s32.totalorder %v1982_v8, 8  ;;  %p2905_p13 = scmp.ne.s32.totalorder %s2006_s4, %s2904_s10  ;;  %p2910_p1 = scmp.lt.s32.totalorder %s2904_s10, %s2904_s10 }
 0x68a   :  { %p2911_p2 = por %p2910_p1, %p2909_p0 }
 0x68c   :  { %p2912_p3 = pnand %p2911_p2, %p2905_p13 }
 0x68f   :  { %v2777_v45 = vpop.eup %2776 }
 0x690   :  { %v1378_v49 = vadd.f32 1.0, %v2777_v45  ;;  %v1892_v45 = vld [vmem:[#allocation9 + $0x20] sm:$0xff] }
 0x691   :  { %v2779_v54 = vpop.eup %2778 }
 0x692   :  { %2782 = vrcp.f32 %v1378_v49  ;;  %v1387_v55 = vadd.f32 1.0, %v2779_v54  ;;  %v2781_v56 = vpop.eup %2780  ;;  %v1894_v54 = vld [vmem:[#allocation9 + $0x30] sm:$0xff] }
 0x693   :  { %2784 = vtanh.f32 %v1390_v48  ;;  %v1398_v6 = vadd.f32 1.0, %v2781_v56  ;;  %v1893_v48 = vld [vmem:[#allocation9 + $0x28] sm:$0xff] }
 0x694   :  { %2786 = vrcp.f32 %v1387_v55  ;;  %v2666_v49 = vpack.c.bf16 %v1893_v48, %v1892_v45  ;;  %v1895_v55 = vld [vmem:[#allocation9 + $0x38] sm:$0xff] }
 0x695   :  { %2788 = vrcp.f32 %v1398_v6  ;;  %v2669_v56 = vpack.c.bf16 %v1895_v55, %v1894_v54  ;;  %v1898_v6 = vld [vmem:[#allocation9 + $0x50] sm:$0xff] }
 0x69c   :  { %v2783_v60 = vpop.eup %2782 }
 0x69d   :  { %v2785_v3 = vpop.eup %2784 }
 0x69e   :  { %v2787_v5 = vpop.eup %2786  ;;  %v1402_v24 = vmul.f32 %v2785_v3, %v2783_v60  ;;  %v1896_v60 = vld [vmem:[#allocation9 + $0x40] sm:$0xff]  ;;  %v1897_v3 = vld [vmem:[#allocation9 + $0x48] sm:$0xff] }
 0x69f   :  { %v1401_v11 = vmul.f32 %v2787_v5, %v3362_v61  ;;  %v2789_v59 = vpop.eup %2788  ;;  %v2672_v5 = vpack.c.bf16 %v1897_v3, %v1896_v60 }
 0x6a1   :  { %v3407_v12 = vadd.f32 %v1402_v24, %v1401_v11  ;;  %v1899_v11 = vld [vmem:[#allocation9 + $0x58] sm:$0xff] }
 0x6a2   :  { %v2675_v24 = vpack.c.bf16 %v1899_v11, %v1898_v6 }
 0x6a3   :  { %2790 = vtanh.f32 %v3407_v12 }
 0x6ad   :  { %v2791_v15 = vpop.eup %2790 }
 0x6ae   :  { %v1405_v21 = vmul.f32 %v2791_v15, %v2789_v59  ;;  %v1902_v15 = vld [vmem:[#allocation9 + $0x70] sm:$0xff] }
 0x6b0   :  { %1481 = vmatmul.mubr.f32.vlgmr.msra.gmra.mrb[12].mxu0 %v1405_v21  ;;  %v1860_v23 = vrot.slane %v1405_v21, %v3271_v28  ;;  %1552 = vmatmul.mubr.f32.vlgmr.msra.gmra.mrb[12].mxu1 %v1405_v21  ;;  %v1903_v21 = vld [vmem:[#allocation9 + $0x78] sm:$0xff] }
 0x6b1   :  { %2598 = vmatpush1.bf16.msra.mxu0 %v3038_v9  ;;  %2630 = vmatpush1.bf16.msra.mxu1 %v3041_v13 }
 0x6b2   :  { %2600 = vmatprep.subr.bf16.mxu0 %v3045_v17  ;;  %2632 = vmatprep.subr.bf16.mxu1 %v3047_v18  ;;  %v3416_v61 = vsel %vm1882_vm4, %v3371_v43, %v1860_v23  ;;  %v2681_v23 = vpack.c.bf16 %v1903_v21, %v1902_v15 }
 0x6b3   :  { %1693 = vmatprep.mubr.f32.mxu0 %v2942_v0  ;;  %1764 = vmatprep.mubr.f32.mxu1 %v2942_v0 }
 0x6b5   :  { %2602 = vmatpush1.bf16.msra.mxu0 %v3050_v22  ;;  %2634 = vmatpush1.bf16.msra.mxu1 %v3054_v26 }
 0x6b6   :  { %2604 = vmatprep.subr.bf16.mxu0 %v3056_v27  ;;  %2636 = vmatprep.subr.bf16.mxu1 %v3058_v31 }
 0x6b9   :  { %2606 = vmatpush1.bf16.msra.mxu0 %v3061_v35  ;;  %2638 = vmatpush1.bf16.msra.mxu1 %v3065_v39  ;;  %v1415_v39 = vld [vmem:[%s1414_s25] ss:$8 sm:$0xf] }
 0x6ba   :  { %2608 = vmatprep.subr.bf16.mxu0 %v3067_v40  ;;  %2640 = vmatprep.subr.bf16.mxu1 %v3070_v44 }
 0x6bd   :  { %2610 = vmatpush1.bf16.msra.mxu0 %v3073_v51  ;;  %2642 = vmatpush1.bf16.msra.mxu1 %v3077_v52 }
 0x6be   :  { %2612 = vmatprep.subr.bf16.mxu0 %v3079_v53  ;;  %2644 = vmatprep.subr.bf16.mxu1 %v3082_v57 }
 0x6c1   :  { %2614 = vmatpush1.bf16.msra.mxu0 %v3085_v63  ;;  %2646 = vmatpush1.bf16.msra.mxu1 %v3089_v1 }
 0x6c2   :  { %2616 = vmatprep.subr.bf16.mxu0 %v3091_v2  ;;  %2648 = vmatprep.subr.bf16.mxu1 %v3094_v7 }
 0x6c5   :  { %2618 = vmatpush1.bf16.msra.mxu0 %v3097_v16  ;;  %2650 = vmatpush1.bf16.msra.mxu1 %v3101_v19 }
 0x6c6   :  { %2620 = vmatprep.subr.bf16.mxu0 %v3103_v20  ;;  %2652 = vmatprep.subr.bf16.mxu1 %v3106_v25 }
 0x6c9   :  { %2622 = vmatpush1.bf16.msra.mxu0 %v3109_v34  ;;  %2654 = vmatpush1.bf16.msra.mxu1 %v3113_v36 }
 0x6ca   :  { %2624 = vmatprep.subr.bf16.mxu0 %v3115_v37  ;;  %2656 = vmatprep.subr.bf16.mxu1 %v3118_v42 }
 0x6cd   :  { %2626 = vmatpush1.bf16.msra.mxu0 %v3121_v46  ;;  %2658 = vmatpush1.bf16.msra.mxu1 %v3125_v47 }
 0x6ce   :  { %2659 = vmatprep.subr.bf16.mxu0 %v2944_v38 }
 0x783   :  { %v1482_v9 = vpop.f32.mrb[12].mxu0  ;;  %v1553_v13 = vpop.f32.mrb[12].mxu1 }
 0x784   :  { %v1484_v17 = vpop.f32.mrb[13].mxu0  ;;  %v1555_v18 = vpop.f32.mrb[13].mxu1 }
 0x785   :  { %v1562_v22 = vcombine.low %v1482_v9, %v1484_v17  ;;  %v1563_v26 = vcombine.low %v1553_v13, %v1555_v18 }
 0x787   :  { %v1570_v27 = vrot.slane %v1562_v22, %v3172_v58  ;;  %v1577_v31 = vrot.slane %v1563_v26, %v3172_v58 }
 0x789   :  { %v1578_v35 = vcombine.low %v1570_v27, %v1577_v31 }
 0x78b   :  { %v1585_v40 = vrot.slane %v1578_v35, %v3172_v58  ;;  %v1628_v35 = vld [vmem:[%s1627_s30] ss:$8 sm:$0xf] }
 0x78d   :  { %v1587_v44 = vadd.f32 %v1585_v40, %v1415_v39 }
 0x78f   :  { %v2077_v51 = vmul.f32 -1.442695, %v1587_v44  ;;  %v1595_v52 = vrot.slane %v1587_v44, 1  ;;  %v1606_v57 = vrot.slane %v1587_v44, 3  ;;  %v1603_v2 = vrot.slane %v1587_v44, 2 }
 0x791   :  { %2792 = vpow2.f32 %v2077_v51  ;;  %v2078_v53 = vmul.f32 -1.442695, %v1595_v52  ;;  %v2079_v63 = vmul.f32 -1.442695, %v1606_v57 }
 0x793   :  { %2794 = vpow2.f32 %v2078_v53 }
 0x794   :  { %2796 = vpow2.f32 %v2079_v63 }
 0x79b   :  { %v2793_v1 = vpop.eup %2792 }
 0x79c   :  { %v1591_v7 = vadd.f32 1.0, %v2793_v1 }
 0x79d   :  { %v2795_v16 = vpop.eup %2794 }
 0x79e   :  { %2798 = vrcp.f32 %v1591_v7  ;;  %v1600_v19 = vadd.f32 1.0, %v2795_v16  ;;  %v2797_v20 = vpop.eup %2796 }
 0x79f   :  { %2800 = vtanh.f32 %v1603_v2  ;;  %v1611_v37 = vadd.f32 1.0, %v2797_v20 }
 0x7a0   :  { %2802 = vrcp.f32 %v1600_v19 }
 0x7a1   :  { %2804 = vrcp.f32 %v1611_v37 }
 0x7a8   :  { %v2799_v25 = vpop.eup %2798 }
 0x7a9   :  { %v2801_v34 = vpop.eup %2800 }
 0x7aa   :  { %v2803_v36 = vpop.eup %2802  ;;  %v1615_v46 = vmul.f32 %v2801_v34, %v2799_v25 }
 0x7ab   :  { %v1614_v42 = vmul.f32 %v2803_v36, %v3407_v12  ;;  %v2805_v43 = vpop.eup %2804  ;;  %v1900_v12 = vld [vmem:[#allocation9 + $0x60] sm:$0xff] }
 0x7ad   :  { %v3450_v47 = vadd.f32 %v1615_v46, %v1614_v42 }
 0x7af   :  { %2806 = vtanh.f32 %v3450_v47 }
 0x7b9   :  { %v2807_v29 = vpop.eup %2806 }
 0x7ba   :  { %v1618_v30 = vmul.f32 %v2807_v29, %v2805_v43 }
 0x7bc   :  { %1694 = vmatmul.mubr.f32.vlgmr.msra.gmra.mrb[14].mxu0 %v1618_v30  ;;  %1765 = vmatmul.mubr.f32.vlgmr.msra.gmra.mrb[14].mxu1 %v1618_v30  ;;  %v1866_v32 = vrot.slane %v1618_v30, %v3271_v28 }
 0x7bd   :  { %2661 = vmatpush3.bf16.msra.mxu0 %v2660_v10  ;;  %2144 = vmatprep.mubr.msk.f32.mxu0 %vm2945_vm6, %v2942_v0  ;;  %v1901_v0 = vld [vmem:[#allocation9 + $0x68] sm:$0xff] }
 0x7be   :  { %v3455_v4 = vsel %vm1884_vm5, %v3416_v61, %v1866_v32  ;;  %2662 = vmatprep.subr.bf16.mxu0 %v2944_v38  ;;  %v2678_v59 = vpack.c.bf16 %v1901_v0, %v1900_v12 }
 0x7c1   :  { %2664 = vmatpush3.bf16.msra.mxu0 %v2663_v41 }
 0x7c2   :  { %2665 = vmatprep.subr.bf16.mxu0 %v2944_v38 }
 0x7c5   :  { %2667 = vmatpush3.bf16.msra.mxu0 %v2666_v49 }
 0x7c6   :  { %2668 = vmatprep.subr.bf16.mxu0 %v2944_v38 }
 0x7c9   :  { %2670 = vmatpush3.bf16.msra.mxu0 %v2669_v56 }
 0x7ca   :  { %2671 = vmatprep.subr.bf16.mxu0 %v2944_v38 }
 0x7cd   :  { %2673 = vmatpush3.bf16.msra.mxu0 %v2672_v5 }
 0x7ce   :  { %2674 = vmatprep.subr.bf16.mxu0 %v2944_v38 }
 0x7d1   :  { %2676 = vmatpush3.bf16.msra.mxu0 %v2675_v24 }
 0x7d2   :  { %2677 = vmatprep.subr.bf16.mxu0 %v2944_v38 }
 0x7d5   :  { %2679 = vmatpush3.bf16.msra.mxu0 %v2678_v59 }
 0x7d6   :  { %2680 = vmatprep.subr.bf16.mxu0 %v2944_v38 }
 0x7d9   :  { %2682 = vmatpush3.bf16.msra.mxu0 %v2681_v23 }
 0x88f   :  { %v1695_v61 = vpop.f32.mrb[14].mxu0  ;;  %v1766_v9 = vpop.f32.mrb[14].mxu1 }
 0x890   :  { %v1697_v13 = vpop.f32.mrb[15].mxu0  ;;  %v1768_v17 = vpop.f32.mrb[15].mxu1 }
 0x891   :  { %v1775_v18 = vcombine.low %v1695_v61, %v1697_v13  ;;  %v1776_v22 = vcombine.low %v1766_v9, %v1768_v17 }
 0x893   :  { %v1783_v26 = vrot.slane %v1775_v18, %v3172_v58  ;;  %v1790_v27 = vrot.slane %v1776_v22, %v3172_v58 }
 0x895   :  { %v1791_v31 = vcombine.low %v1783_v26, %v1790_v27 }
 0x897   :  { %v1798_v39 = vrot.slane %v1791_v31, %v3172_v58 }
 0x899   :  { %v1800_v40 = vadd.f32 %v1798_v39, %v1628_v35 }
 0x89b   :  { %v2083_v44 = vmul.f32 -1.442695, %v1800_v40  ;;  %v1808_v51 = vrot.slane %v1800_v40, 1  ;;  %v1819_v53 = vrot.slane %v1800_v40, 3  ;;  %v1816_v1 = vrot.slane %v1800_v40, 2 }
 0x89d   :  { %2808 = vpow2.f32 %v2083_v44  ;;  %v2084_v52 = vmul.f32 -1.442695, %v1808_v51  ;;  %v2085_v57 = vmul.f32 -1.442695, %v1819_v53 }
 0x89f   :  { %2810 = vpow2.f32 %v2084_v52 }
 0x8a0   :  { %2812 = vpow2.f32 %v2085_v57 }
 0x8a7   :  { %v2809_v63 = vpop.eup %2808 }
 0x8a8   :  { %v1804_v2 = vadd.f32 1.0, %v2809_v63 }
 0x8a9   :  { %v2811_v7 = vpop.eup %2810 }
 0x8aa   :  { %2814 = vrcp.f32 %v1804_v2  ;;  %v1813_v16 = vadd.f32 1.0, %v2811_v7  ;;  %v2813_v19 = vpop.eup %2812 }
 0x8ab   :  { %2816 = vtanh.f32 %v1816_v1  ;;  %v1824_v34 = vadd.f32 1.0, %v2813_v19 }
 0x8ac   :  { %2818 = vrcp.f32 %v1813_v16 }
 0x8ad   :  { %2820 = vrcp.f32 %v1824_v34 }
 0x8b4   :  { %v2815_v20 = vpop.eup %2814 }
 0x8b5   :  { %v2817_v58 = vpop.eup %2816 }
 0x8b6   :  { %v2819_v25 = vpop.eup %2818  ;;  %v1828_v37 = vmul.f32 %v2817_v58, %v2815_v20 }
 0x8b7   :  { %v1827_v36 = vmul.f32 %v2819_v25, %v3450_v47  ;;  %v2821_v46 = vpop.eup %2820 }
 0x8b9   :  { %v1829_v42 = vadd.f32 %v1828_v37, %v1827_v36 }
 0x8bb   :  { %2822 = vtanh.f32 %v1829_v42 }
 0x8c5   :  { %v2823_v43 = vpop.eup %2822 }
 0x8c6   :  { %v1831_v29 = vmul.f32 %v2823_v43, %v2821_v46 }
 0x8c8   :  { %v1872_v30 = vrot.slane %v1831_v29, %v3271_v28 }
 0x8ca   :  { %v1887_v32 = vsel %vm1886_vm7, %v3455_v4, %v1872_v30 }
 0x8cb   :  { %2145 = vmatmul.mubr.f32.vlgmr.msra.gmra.mrb[16].mxu0 %v1887_v32 }
 0x99e   :  { %v1977_v47 = vpop.f32.mrb[16].mxu0 }
 0x99f   :  { %v1978_v10 = vadd.f32 %v2086_v33, %v1977_v47  ;;  %v2146_v38 = vpop.f32.mrb[17].mxu0 }
 0x9a1   :  { %v1984_v62 = vsel %vm1983_vm8, %v1978_v10, -1e+30 }
 0x9a2   :  { %1985 = vmax.xlane.f32.xlu0 %v1984_v62 }
 0xa2f   :  { %v1986_v14 = vpop.xlane.xlu0 %1985 }
 0xa30   :  { %v1987_v41 = vsub.f32 %v1984_v62, %v1986_v14 }
 0xa32   :  { %v1988_v45 = vmul.f32 1.442695, %v1987_v41 }
 0xa34   :  { %2824 = vpow2.f32 %v1988_v45 }
 0xa3e   :  { %v2825_v28 = vpop.eup %2824 }
 0xa3f   :  { %1990 = vadd.xlane.f32.xlu0 %v2825_v28 }
 0xacc   :  { %v1991_v4 = vpop.xlane.xlu0 %1990 }
 0xacd   :  { %2826 = vlog2.f32 %v1991_v4 }
 0xad7   :  { %v2827_v48 = vpop.eup %2826 }
 0xad8   :  { %v1993_v50 = vmul.f32 0.6931472, %v2827_v48 }
 0xada   :  { %v1994_v49 = vadd.f32 %v1993_v50, %v1986_v14 }
 0xadc   :  { %v1995_v54 = vsub.f32 %v1984_v62, %v1994_v49 }
 0xade   :  { %v1996_v55 = vmul.f32 9.0, %v1995_v54 }
 0xae0   :  { %v1997_v56 = vadd.f32 1.0, %v1996_v55 }
 0xae2   :  { %1998 = vst [vmem:[#allocation10] sm:$0xff] %v1997_v56 }
 0xae3   :  { %2915 = shalt.err (!%p2912_p3)
}
 0xae4   :  { %s2916_s1 = scalar_lea.hbm %s3485_s5, 128 }
 0xae5   :  { %p2917_p4 = scmp.ne.s32.totalorder %s3485_s5, %s2916_s1  ;;  %p2920_p5 = scmp.lt.u32.totalorder %s2916_s1, %s3485_s5 }
 0xae7   :  { %p2922_p6 = pnand %p2920_p5, %p2917_p4 }
 0xae9   :  { %2925 = shalt.err (!%p2922_p6)
}
 0xaea   :  { %2008 = dma.vmem_to_hbm [thread:$0]  %s2006_s4, 128, %s3485_s5, [#allocation6]  }
 0xaeb   :  { %2932 = dma.done.wait [#allocation6], 128  }
 0xaec   :  { %2933 = vsyncadd [#allocation6], 4294967168 }
 0xaed   :  { %2012 = vsyncpa [#allocation5], 1 }
 0xaee   :  { %2013 = vsyncpa [#allocation8], 1 }
 0xaef   :  { %2014 = vsyncpa [#allocation6], 1 }

</bundles_post_ra>
